<compile_context>
chip_gen: v5e
topology: v5e:2x2
jax: 0.10.0
libtpu: 0.0.40
codegen_flags: <defaults>
</compile_context>

<pallas_src>
import jax
import jax.numpy as jnp
from jax import lax
from jax.experimental import pallas as pl
from jax.experimental.pallas import tpu as pltpu


def _round_up(x, m):
    return ((x + m - 1) // m) * m


def _make_conv_kernel(K, TH, W):
    """Per-(batch, row-band) kernel: K accumulated MXU matmuls + folded BN + SiLU epilogue."""
    TW = TH * W

    def kernel(p_ref, w_ref, scale_ref, bias_ref, o_ref):
        # p_ref:     ((TH + K - 1) * W, KCin)  kw-im2col rows for this band (+ kh halo rows)
        # w_ref:     (K, KCin, Cout_p)         per-kh folded weight slabs (resident in VMEM)
        # scale_ref: (1, Cout_p) f32           folded BN scale = gamma / sqrt(var + eps)
        # bias_ref:  (1, Cout_p) f32           folded BN bias  = beta - mean * scale
        # o_ref:     (TW, Cout_p)              output rows for this band
        acc = None
        for kh in range(K):  # static unroll: one f32 accumulator across the K matmuls
            patch = p_ref[pl.ds(kh * W, TW), :]
            part = jnp.dot(patch, w_ref[kh], preferred_element_type=jnp.float32)
            acc = part if acc is None else acc + part
        y = acc * scale_ref[...] + bias_ref[...]          # BatchNorm(eval) epilogue in f32
        o_ref[...] = (y * jax.nn.sigmoid(y)).astype(o_ref.dtype)   # SiLU, cast at store

    return kernel


def conv_forward(x_nchw, weight_oihw, gamma, beta, running_mean, running_var, *,
                 stride=1, eps=1e-5, compute_dtype=jnp.bfloat16, out_dtype=None,
                 out_layout="NCHW", row_tile_px=1024):
    """Equivalent of Conv.forward: act(bn(conv(x))), act = SiLU, groups=1, dilation=1."""
    # TODO(synk): only stride=1, groups=1, dilation=1 implemented (the Conv module defaults).
    assert stride == 1, "only stride=1 (groups=1, dilation=1) implemented"
    if out_dtype is None:
        out_dtype = compute_dtype
    N, Cin, H, W = x_nchw.shape
    Cout, Cin_w, K, K2 = weight_oihw.shape
    assert Cin_w == Cin and K == K2
    assert K % 2 == 1, "autopad 'same' with pad=K//2 requires an odd kernel size"
    pad = K // 2
    KCin = K * Cin  # contraction dim: kw-im2col only (K x amplification, not K*K x)
    # Only pad Cout to a lane-dense multiple of 128 when it's already large; for small Cout the
    # extra HBM writeback would cost more than masked stores do.
    Cout_p = _round_up(Cout, 128) if Cout >= 128 else Cout

    itemsize_c = jnp.dtype(compute_dtype).itemsize
    itemsize_o = jnp.dtype(out_dtype).itemsize

    # ---- row-band tile: target ~row_tile_px output pixels per grid step, then shrink until
    #      the per-step VMEM budget fits v7x's 64 MiB physical VMEM (v5e/v6e have 128 MiB). ----
    TH = max(1, min(H, max(1, row_tile_px // max(W, 1))))

    def _vmem_need(th):
        th_halo = th + 2 * pad
        return (2 * th_halo * W * KCin * itemsize_c      # patch band, double-buffered
                + 2 * K * KCin * Cout_p * itemsize_c     # resident weight (x2 headroom)
                + 2 * th * W * Cout_p * itemsize_o       # output band, double-buffered
                + th * W * Cout_p * 4                    # live f32 accumulator
                + 4 * Cout_p * 4)                        # scale + bias

    budget = 40 << 20
    while _vmem_need(TH) > budget and TH > 1:
        TH = max(1, TH // 2)
    n_bands = -(-H // TH)
    TH_halo = TH + 2 * pad
    rows_total = n_bands * TH + 2 * pad

    # ---- wrapper glue (plain JAX, fused by XLA): NHWC + early compute-dtype cast + kw-im2col
    #      + per-band row slabs with a (K-1)-row halo. ----
    x_nhwc = jnp.transpose(x_nchw, (0, 2, 3, 1)).astype(compute_dtype)
    x_wpad = jnp.pad(x_nhwc, ((0, 0), (0, 0), (pad, pad), (0, 0)))
    cols = jnp.concatenate([x_wpad[:, :, kw:kw + W, :] for kw in range(K)], axis=-1)
    cols = jnp.pad(cols, ((0, 0), (pad, rows_total - H - pad), (0, 0), (0, 0)))
    bands = jnp.stack([cols[:, b * TH:b * TH + TH_halo] for b in range(n_bands)], axis=1)
    patches = bands.reshape(N, n_bands, TH_halo * W, KCin)

    # Weight -> (Kh, Kw*Cin, Cout_p), matching the (kw, cin) im2col ordering.
    w3d = jnp.transpose(weight_oihw, (2, 3, 1, 0)).reshape(K, KCin, Cout).astype(jnp.float32)
    w3d = jnp.pad(w3d, ((0, 0), (0, 0), (0, Cout_p - Cout))).astype(compute_dtype)

    # Fold BatchNorm (inference) into per-channel scale/bias, kept in f32.
    inv_std = gamma.astype(jnp.float32) / jnp.sqrt(running_var.astype(jnp.float32) + eps)
    scale = jnp.pad(inv_std, (0, Cout_p - Cout)).reshape(1, Cout_p)
    bias = jnp.pad(beta.astype(jnp.float32) - running_mean.astype(jnp.float32) * inv_std,
                   (0, Cout_p - Cout)).reshape(1, Cout_p)

    kernel = _make_conv_kernel(K, TH, W)
    vmem_limit = int(min(max(2 * _vmem_need(TH), 32 << 20), 56 << 20))

    out = pl.pallas_call(
        kernel,
        out_shape=jax.ShapeDtypeStruct((N, n_bands, TH * W, Cout_p), out_dtype),
        grid_spec=pltpu.PrefetchScalarGridSpec(
            num_scalar_prefetch=0,
            grid=(N, n_bands),
            in_specs=[
                pl.BlockSpec((None, None, TH_halo * W, KCin), lambda n, b: (n, b, 0, 0)),
                # Constant block index -> weight / scale / bias stay resident in VMEM.
                pl.BlockSpec((K, KCin, Cout_p), lambda n, b: (0, 0, 0)),
                pl.BlockSpec((1, Cout_p), lambda n, b: (0, 0)),
                pl.BlockSpec((1, Cout_p), lambda n, b: (0, 0)),
            ],
            out_specs=pl.BlockSpec((None, None, TH * W, Cout_p), lambda n, b: (n, b, 0, 0)),
        ),
        compiler_params=pltpu.CompilerParams(
            dimension_semantics=("parallel", "parallel"),
            vmem_limit_bytes=vmem_limit),
    )(patches, w3d, scale, bias)

    out = out.reshape(N, n_bands * TH, W, Cout_p)[:, :H, :, :Cout]    # NHWC, crop row/chan pad
    if out_layout == "NHWC":
        return out                                                    # no extra transpose pass
    return jnp.transpose(out, (0, 3, 1, 2))                           # NCHW (PyTorch parity)


def reference_forward(x_nchw, weight_oihw, gamma, beta, running_mean, running_var, *, eps=1e-5):
    """Pure-JAX f32 reference (lax conv, highest precision) for correctness checking."""
    K = weight_oihw.shape[-1]
    pad = K // 2
    y = lax.conv_general_dilated(
        x_nchw.astype(jnp.float32), weight_oihw.astype(jnp.float32),
        window_strides=(1, 1), padding=((pad, pad), (pad, pad)),
        dimension_numbers=("NCHW", "OIHW", "NCHW"),
        precision=lax.Precision.HIGHEST)
    inv_std = gamma / jnp.sqrt(running_var + eps)
    scale = inv_std.reshape(1, -1, 1, 1)
    bias = (beta - running_mean * inv_std).reshape(1, -1, 1, 1)
    y = y * scale + bias
    return y * jax.nn.sigmoid(y)


if __name__ == "__main__":
    key = jax.random.PRNGKey(0)
    N, Cin, H, W = 2, 4, 16, 16
    Cout, K = 8, 3

    k_x, k_w, k_g, k_b, k_m, k_v, k_w1 = jax.random.split(key, 7)
    x = jax.random.normal(k_x, (N, Cin, H, W), dtype=jnp.float32)
    weight = jax.random.normal(k_w, (Cout, Cin, K, K), dtype=jnp.float32) * 0.1
    gamma = 1.0 + 0.1 * jax.random.normal(k_g, (Cout,), dtype=jnp.float32)
    beta = 0.1 * jax.random.normal(k_b, (Cout,), dtype=jnp.float32)
    running_mean = 0.1 * jax.random.normal(k_m, (Cout,), dtype=jnp.float32)
    running_var = jnp.abs(1.0 + 0.1 * jax.random.normal(k_v, (Cout,), dtype=jnp.float32))

    ref = reference_forward(x, weight, gamma, beta, running_mean, running_var)

    # f32 compute path, NCHW output (module-parity).  Tolerance is kept modest so the check is
    # robust to MXU f32-matmul precision defaults while still catching any layout/indexing bug.
    out_f32 = conv_forward(x, weight, gamma, beta, running_mean, running_var,
                           compute_dtype=jnp.float32, out_layout="NCHW")
    out_f32 = jax.block_until_ready(out_f32)
    assert out_f32.shape == (N, Cout, H, W)
    assert jnp.allclose(out_f32, ref, atol=1e-2, rtol=1e-2), "f32 kernel mismatch vs reference"

    # Default fast path: bf16 MXU operands, f32 accumulation, bf16 NHWC output (no transpose).
    out_bf16 = conv_forward(x, weight, gamma, beta, running_mean, running_var,
                            out_layout="NHWC")
    out_bf16 = jax.block_until_ready(out_bf16)
    assert out_bf16.shape == (N, H, W, Cout)
    ref_nhwc = jnp.transpose(ref, (0, 2, 3, 1))
    assert jnp.allclose(out_bf16.astype(jnp.float32), ref_nhwc, atol=6e-2, rtol=6e-2), \
        "bf16 kernel mismatch vs reference"

    # 1x1 conv path (the Conv module's default kernel size k=1).
    Cout2 = 16
    weight1 = jax.random.normal(k_w1, (Cout2, Cin, 1, 1), dtype=jnp.float32) * 0.1
    gamma1 = jnp.ones((Cout2,), jnp.float32)
    beta1 = jnp.zeros((Cout2,), jnp.float32)
    mean1 = jnp.zeros((Cout2,), jnp.float32)
    var1 = jnp.ones((Cout2,), jnp.float32)
    ref1 = reference_forward(x, weight1, gamma1, beta1, mean1, var1)
    out1 = conv_forward(x, weight1, gamma1, beta1, mean1, var1,
                        compute_dtype=jnp.float32, out_layout="NCHW")
    out1 = jax.block_until_ready(out1)
    assert out1.shape == (N, Cout2, H, W)
    assert jnp.allclose(out1, ref1, atol=1e-2, rtol=1e-2), "1x1 kernel mismatch vs reference"

    print("KERNEL_OK")
</pallas_src>

<mosaic_0001>
module attributes {stable_mosaic.version = 11 : i64} {
  func.func @kernel(%arg0: i32, %arg1: i32, %arg2: memref<1x1x288x12xf32, #tpu.memory_space<vmem>>, %arg3: memref<3x12x8xf32, #tpu.memory_space<vmem>>, %arg4: memref<1x8xf32, #tpu.memory_space<vmem>>, %arg5: memref<1x8xf32, #tpu.memory_space<vmem>>, %arg6: memref<1x1x256x8xf32, #tpu.memory_space<vmem>>) attributes {dimension_semantics = [#tpu.dimension_semantics<parallel>, #tpu.dimension_semantics<parallel>], iteration_bounds = array<i64: 2, 1>, scalar_prefetch = 0 : i64, scratch_operands = 0 : i64, tpu.core_type = #tpu.core_type<tc>, window_params = [{transform_indices = @transform_0, window_bounds = array<i64: 1, 1, 288, 12>}, {pipeline_mode = #tpu.pipeline_mode<synchronous>, transform_indices = @transform_1, window_bounds = array<i64: 3, 12, 8>}, {pipeline_mode = #tpu.pipeline_mode<synchronous>, transform_indices = @transform_2, window_bounds = array<i64: 1, 8>}, {pipeline_mode = #tpu.pipeline_mode<synchronous>, transform_indices = @transform_3, window_bounds = array<i64: 1, 8>}, {transform_indices = @transform_4, window_bounds = array<i64: 1, 1, 256, 8>}]} {
    %c0 = arith.constant 0 : index
    %c0_0 = arith.constant 0 : index
    %c0_1 = arith.constant 0 : index
    %c0_2 = arith.constant 0 : index
    %0 = vector.load %arg2[%c0, %c0_0, %c0_1, %c0_2] : memref<1x1x288x12xf32, #tpu.memory_space<vmem>>, vector<1x1x256x12xf32>
    %1 = vector.shape_cast %0 : vector<1x1x256x12xf32> to vector<256x12xf32>
    %c0_3 = arith.constant 0 : index
    %c0_4 = arith.constant 0 : index
    %c0_5 = arith.constant 0 : index
    %2 = vector.load %arg3[%c0_3, %c0_4, %c0_5] : memref<3x12x8xf32, #tpu.memory_space<vmem>>, vector<1x12x8xf32>
    %3 = vector.shape_cast %2 : vector<1x12x8xf32> to vector<12x8xf32>
    %cst = arith.constant dense<0.000000e+00> : vector<256x8xf32>
    %4 = tpu.matmul %1, %3, %cst {dimension_numbers = #tpu.dot_dimension_numbers<[1], [0], [0], [1], [0, 0, 1, 1], [], []>} : vector<256x12xf32>, vector<12x8xf32>, vector<256x8xf32> -> vector<256x8xf32>
    %c0_6 = arith.constant 0 : index
    %c0_7 = arith.constant 0 : index
    %c16 = arith.constant 16 : index
    %c0_8 = arith.constant 0 : index
    %5 = vector.load %arg2[%c0_6, %c0_7, %c16, %c0_8] : memref<1x1x288x12xf32, #tpu.memory_space<vmem>>, vector<1x1x256x12xf32>
    %6 = vector.shape_cast %5 : vector<1x1x256x12xf32> to vector<256x12xf32>
    %c1 = arith.constant 1 : index
    %c0_9 = arith.constant 0 : index
    %c0_10 = arith.constant 0 : index
    %7 = vector.load %arg3[%c1, %c0_9, %c0_10] : memref<3x12x8xf32, #tpu.memory_space<vmem>>, vector<1x12x8xf32>
    %8 = vector.shape_cast %7 : vector<1x12x8xf32> to vector<12x8xf32>
    %cst_11 = arith.constant dense<0.000000e+00> : vector<256x8xf32>
    %9 = tpu.matmul %6, %8, %cst_11 {dimension_numbers = #tpu.dot_dimension_numbers<[1], [0], [0], [1], [0, 0, 1, 1], [], []>} : vector<256x12xf32>, vector<12x8xf32>, vector<256x8xf32> -> vector<256x8xf32>
    %10 = arith.addf %4, %9 : vector<256x8xf32>
    %c0_12 = arith.constant 0 : index
    %c0_13 = arith.constant 0 : index
    %c32 = arith.constant 32 : index
    %c0_14 = arith.constant 0 : index
    %11 = vector.load %arg2[%c0_12, %c0_13, %c32, %c0_14] : memref<1x1x288x12xf32, #tpu.memory_space<vmem>>, vector<1x1x256x12xf32>
    %12 = vector.shape_cast %11 : vector<1x1x256x12xf32> to vector<256x12xf32>
    %c2 = arith.constant 2 : index
    %c0_15 = arith.constant 0 : index
    %c0_16 = arith.constant 0 : index
    %13 = vector.load %arg3[%c2, %c0_15, %c0_16] : memref<3x12x8xf32, #tpu.memory_space<vmem>>, vector<1x12x8xf32>
    %14 = vector.shape_cast %13 : vector<1x12x8xf32> to vector<12x8xf32>
    %cst_17 = arith.constant dense<0.000000e+00> : vector<256x8xf32>
    %15 = tpu.matmul %12, %14, %cst_17 {dimension_numbers = #tpu.dot_dimension_numbers<[1], [0], [0], [1], [0, 0, 1, 1], [], []>} : vector<256x12xf32>, vector<12x8xf32>, vector<256x8xf32> -> vector<256x8xf32>
    %16 = arith.addf %10, %15 : vector<256x8xf32>
    %c0_18 = arith.constant 0 : index
    %c0_19 = arith.constant 0 : index
    %17 = vector.load %arg4[%c0_18, %c0_19] : memref<1x8xf32, #tpu.memory_space<vmem>>, vector<1x8xf32>
    %18 = vector.broadcast %17 : vector<1x8xf32> to vector<256x8xf32>
    %19 = arith.mulf %16, %18 : vector<256x8xf32>
    %c0_20 = arith.constant 0 : index
    %c0_21 = arith.constant 0 : index
    %20 = vector.load %arg5[%c0_20, %c0_21] : memref<1x8xf32, #tpu.memory_space<vmem>>, vector<1x8xf32>
    %21 = vector.broadcast %20 : vector<1x8xf32> to vector<256x8xf32>
    %22 = arith.addf %19, %21 : vector<256x8xf32>
    %23 = arith.negf %22 : vector<256x8xf32>
    %24 = math.exp %23 : vector<256x8xf32>
    %cst_22 = arith.constant 1.000000e+00 : f32
    %25 = vector.broadcast %cst_22 : f32 to vector<256x8xf32>
    %26 = arith.addf %25, %24 : vector<256x8xf32>
    %27 = arith.divf %25, %26 : vector<256x8xf32>
    %28 = arith.mulf %22, %27 : vector<256x8xf32>
    %c0_23 = arith.constant 0 : index
    %c0_24 = arith.constant 0 : index
    %c0_25 = arith.constant 0 : index
    %c0_26 = arith.constant 0 : index
    %29 = vector.load %arg6[%c0_23, %c0_24, %c0_25, %c0_26] : memref<1x1x256x8xf32, #tpu.memory_space<vmem>>, vector<1x1x256x8xf32>
    %30 = vector.shape_cast %29 : vector<1x1x256x8xf32> to vector<256x8xf32>
    %31 = vector.shape_cast %28 : vector<256x8xf32> to vector<1x1x256x8xf32>
    tpu.vector_store %arg6[%c0_23, %c0_24, %c0_25, %c0_26], %31 {strides = array<i32>} : memref<1x1x256x8xf32, #tpu.memory_space<vmem>>, vector<1x1x256x8xf32>,
    return
  }
  func.func @transform_0(%arg0: i32, %arg1: i32) -> (i32, i32, i32, i32) {
    %c0_i32 = arith.constant 0 : i32
    %c0_i32_0 = arith.constant 0 : i32
    %c0_i32_1 = arith.constant 0 : i32
    return %arg0, %arg1, %c0_i32, %c0_i32_0 : i32, i32, i32, i32
  }
  func.func @transform_1(%arg0: i32, %arg1: i32) -> (i32, i32, i32) {
    %c0_i32 = arith.constant 0 : i32
    %c0_i32_0 = arith.constant 0 : i32
    %c0_i32_1 = arith.constant 0 : i32
    %c0_i32_2 = arith.constant 0 : i32
    return %c0_i32, %c0_i32_0, %c0_i32_1 : i32, i32, i32
  }
  func.func @transform_2(%arg0: i32, %arg1: i32) -> (i32, i32) {
    %c0_i32 = arith.constant 0 : i32
    %c0_i32_0 = arith.constant 0 : i32
    %c0_i32_1 = arith.constant 0 : i32
    return %c0_i32, %c0_i32_0 : i32, i32
  }
  func.func @transform_3(%arg0: i32, %arg1: i32) -> (i32, i32) {
    %c0_i32 = arith.constant 0 : i32
    %c0_i32_0 = arith.constant 0 : i32
    %c0_i32_1 = arith.constant 0 : i32
    return %c0_i32, %c0_i32_0 : i32, i32
  }
  func.func @transform_4(%arg0: i32, %arg1: i32) -> (i32, i32, i32, i32) {
    %c0_i32 = arith.constant 0 : i32
    %c0_i32_0 = arith.constant 0 : i32
    %c0_i32_1 = arith.constant 0 : i32
    return %arg0, %arg1, %c0_i32, %c0_i32_0 : i32, i32, i32, i32
  }
}

</mosaic_0001>

<bundles_post_ra>
// kernel: tpu_custom_call.1
= control target key start
LH: loop header
LB: loop body
LE: loop exit
PB: predicated region body
PF: predicated region fallthrough
CT: control target
= control target key end

     0   :  { %s2083_s15 = smov 0   ;;  %s2085_s16 = smov 0   ;;  %s2915_s0 = inlined_call_operand.vmem [shape: f32[2,1,288,12], index: 0, kind: input, shape index: {}]   ;;  %s2916_s1 = inlined_call_operand.vmem [shape: f32[3,12,8], index: 1, kind: input, shape index: {}]   ;;  %s2917_s2 = inlined_call_operand.vmem [shape: f32[1,8], index: 2, kind: input, shape index: {}]   ;;  %s2918_s3 = inlined_call_operand.vmem [shape: f32[1,8], index: 3, kind: input, shape index: {}]   ;;  %s2919_s4 = inlined_call_operand.vmem [shape: f32[2,1,256,8], index: 4, kind: output, shape index: {}]  }
   0x1   :  { %s2087_s17 = smov 0  }
   0x2 LB: > { %s26_s18 = sadd.s32 1, %s2052_s16  ;;  %p1729_p0 = scmp.ge.s32.totalorder %s2056_s17, 1  ;;  %s2056_s17 = sphi %s2087_s17, %s14_s17   ;;  %s2052_s16 = sphi %s2085_s16, %s2937_s16   ;;  %s2048_s15 = sphi %s2083_s15, %s2936_s15  }
   0x3   : > { %p28_p1 = scmp.ge.s32.totalorder %s26_s18, 2  ;;  %p182_p2 = scmp.lt.s32.totalorder %s2056_s17, 3 }
   0x5   : > { %s2939_s18 = smov (%p28_p1, %s26_s18), 0  ;;  %p183_p3 = pnand %p1729_p0, %p182_p2 }
   0x6   : > { %p216_p4 = scmp.lt.s32.totalorder (!%p183_p3), %s2048_s15, 1 }
   0x7   : > { %186 = sbr.rel (%p183_p3) target bundleno = 386 (0x182), region = 36 }
   0xc   : > { %v1734_v0 = vld [vmem:[%s2916_s1 + $0x18] sm:$0xf]  ;;  %vm370_vm0 = vcmask 1043456   ;;  %v1802_v1 = vld [vmem:[%s2916_s1 + $0x28] sm:$0xf]  ;;  %v1733_v2 = vld [vmem:[%s2916_s1 + $0x10] sm:$0xff] }
   0xd   : > { %1871 = vmatpush.msk.msra.mxu3 %vm370_vm0, %v1734_v0  ;;  %1803 = vmatpush.msk.msra.mxu2 %vm370_vm0, %v1802_v1  ;;  %v1801_v3 = vld [vmem:[%s2916_s1 + $0x20] sm:$0xff]  ;;  %v267_v4 = vld [vmem:[%s2916_s1 + $0x8] sm:$0xf]  ;;  %s2941_s15 = smov (!%p216_p4, %s2048_s15), 1  ;;  %vm273_vm1 = vcmask 97280   ;;  %vm1600_vm6 = vcmask 64512  }
   0xe   : > { %1735 = vmatpush.msk.msra.mxu0 %vm370_vm0, %v1734_v0  ;;  %1768 = vmatpush.msk.msra.mxu1 %vm370_vm0, %v267_v4  ;;  %v266_v5 = vld [vmem:[%s2916_s1] sm:$0xff]  ;;  %s1877_s5 = smul.u32 288, %s2941_s15  ;;  %s1870_s13 = sshll.u32 %s2941_s15, 8 }
   0xf   : > { %1872 = vmatpush.msra.mxu3 %v1733_v2  ;;  %758 = vmatpush.msra.mxu2 %v1801_v3  ;;  %v2275_v40 = vld [vmem:[%s2917_s2] ss:$0 sm:$0xff]  ;;  %s2359_s19 = scalar_lea.vmem %s2919_s4, %s1870_s13 }
  0x10   : > { %389 = vmatpush.msra.mxu0 %v1733_v2  ;;  %511 = vmatpush.msra.mxu1 %v266_v5  ;;  %s2130_s8 = scalar_lea.vmem %s2915_s0, %s1877_s5  ;;  %v2282_v44 = vld [vmem:[%s2918_s3] ss:$0 sm:$0xff] }
  0x11   : > { %1873 = vmatpush.msk.msrb.mxu3 %vm370_vm0, %v267_v4  ;;  %v2133_v6 = vld [vmem:[%s2130_s8 + $0xd0] sm:$0xff]  ;;  %v609_v7 = vld [vmem:[%s2130_s8 + $0x20] sm:$0xff]  ;;  %v2145_v10 = vld [vmem:[%s2130_s8 + $0xd8] sm:$0xff] }
  0x12   : > { %v236_v8 = vld [vmem:[%s2130_s8 + $0x10] sm:$0xff]  ;;  %1760 = vmatmul.msk.f32.vlgmr.msra.gmra.mxu3 %vm273_vm1, %v2133_v6  ;;  %1804 = vmatmul.msk.f32.vlgmr.msra.gmra.mxu2 %vm273_vm1, %v609_v7  ;;  %v234_v9 = vld [vmem:[%s2130_s8] sm:$0xff]  ;;  %v610_v11 = vld [vmem:[%s2130_s8 + $0x28] sm:$0xff] }
  0x13   : > { %1874 = vmatpush.msrb.mxu3 %v266_v5  ;;  %1736 = vmatmul.msk.f32.vlgmr.msra.gmra.mxu0 %vm273_vm1, %v236_v8  ;;  %v237_v12 = vld [vmem:[%s2130_s8 + $0x18] sm:$0xff]  ;;  %v235_v13 = vld [vmem:[%s2130_s8 + $0x8] sm:$0xff]  ;;  %v2156_v14 = vld [vmem:[%s2130_s8 + $0xe0] sm:$0xff] }
  0x14   : > { %1769 = vmatmul.msk.f32.vlgmr.msra.gmra.mxu1 %vm273_vm1, %v234_v9  ;;  %v611_v15 = vld [vmem:[%s2130_s8 + $0x30] sm:$0xff]  ;;  %v2165_v16 = vld [vmem:[%s2130_s8 + $0xe8] sm:$0xff]  ;;  %v612_v17 = vld [vmem:[%s2130_s8 + $0x38] sm:$0xff] }
  0x15   : > { %1875 = vmatpush.msk.msra.mxu3 %vm370_vm0, %v1802_v1  ;;  %v2174_v18 = vld [vmem:[%s2130_s8 + $0xf0] sm:$0xff]  ;;  %v613_v19 = vld [vmem:[%s2130_s8 + $0x40] sm:$0xff]  ;;  %v2183_v20 = vld [vmem:[%s2130_s8 + $0xf8] sm:$0xff] }
  0x16   : > { %v614_v21 = vld [vmem:[%s2130_s8 + $0x48] sm:$0xff]  ;;  %v2192_v22 = vld [vmem:[%s2130_s8 + $0x100] sm:$0xff]  ;;  %v615_v23 = vld [vmem:[%s2130_s8 + $0x50] sm:$0xff] }
  0x17   : > { %1876 = vmatpush.msra.mxu3 %v1801_v3  ;;  %v2201_v24 = vld [vmem:[%s2130_s8 + $0x108] sm:$0xff]  ;;  %v616_v25 = vld [vmem:[%s2130_s8 + $0x58] sm:$0xff]  ;;  %v2210_v26 = vld [vmem:[%s2130_s8 + $0xc0] sm:$0xff] }
  0x18   : > { %v617_v27 = vld [vmem:[%s2130_s8 + $0x60] sm:$0xff]  ;;  %v2219_v28 = vld [vmem:[%s2130_s8 + $0xc8] sm:$0xff]  ;;  %v619_v30 = vld [vmem:[%s2130_s8 + $0x70] sm:$0xff] }
  0x19   : > { %v618_v29 = vld [vmem:[%s2130_s8 + $0x68] sm:$0xff]  ;;  %v620_v31 = vld [vmem:[%s2130_s8 + $0x78] sm:$0xff]  ;;  %v621_v32 = vld [vmem:[%s2130_s8 + $0x80] sm:$0xff] }
  0x1a   : > { %1761 = vmatmul.msk.f32.gmra.mxu3 %vm273_vm1, %v2145_v10  ;;  %1805 = vmatmul.msk.f32.gmra.mxu2 %vm273_vm1, %v610_v11  ;;  %v622_v33 = vld [vmem:[%s2130_s8 + $0x88] sm:$0xff]  ;;  %v623_v34 = vld [vmem:[%s2130_s8 + $0x90] sm:$0xff]  ;;  %v624_v35 = vld [vmem:[%s2130_s8 + $0x98] sm:$0xff] }
  0x1b   : > { %1737 = vmatmul.msk.f32.gmra.mxu0 %vm273_vm1, %v237_v12  ;;  %v2264_v36 = vld [vmem:[%s2130_s8 + $0xa0] sm:$0xff]  ;;  %v2285_v45 = vld [vmem:[%s2130_s8 + $0xa8] sm:$0xff]  ;;  %v2301_v55 = vld [vmem:[%s2130_s8 + $0xb0] sm:$0xff] }
  0x1c   : > { %1770 = vmatmul.msk.f32.gmra.mxu1 %vm273_vm1, %v235_v13  ;;  %v2318_v3 = vld [vmem:[%s2130_s8 + $0xb8] sm:$0xff] }
  0x22   : > { %1762 = vmatmul.msk.f32.gmra.mxu3 %vm273_vm1, %v2156_v14  ;;  %1806 = vmatmul.msk.f32.gmra.mxu2 %vm273_vm1, %v611_v15 }
  0x23   : > { %1738 = vmatmul.msk.f32.gmra.mxu0 %vm273_vm1, %v609_v7 }
  0x24   : > { %1771 = vmatmul.msk.f32.gmra.mxu1 %vm273_vm1, %v236_v8 }
  0x2a   : > { %1763 = vmatmul.msk.f32.gmra.mxu3 %vm273_vm1, %v2165_v16  ;;  %1807 = vmatmul.msk.f32.gmra.mxu2 %vm273_vm1, %v612_v17 }
  0x2b   : > { %1739 = vmatmul.msk.f32.gmra.mxu0 %vm273_vm1, %v610_v11 }
  0x2c   : > { %1772 = vmatmul.msk.f32.gmra.mxu1 %vm273_vm1, %v237_v12 }
  0x32   : > { %1764 = vmatmul.msk.f32.gmra.mxu3 %vm273_vm1, %v2174_v18  ;;  %1808 = vmatmul.msk.f32.gmra.mxu2 %vm273_vm1, %v613_v19 }
  0x33   : > { %1740 = vmatmul.msk.f32.gmra.mxu0 %vm273_vm1, %v611_v15 }
  0x34   : > { %1773 = vmatmul.msk.f32.gmra.mxu1 %vm273_vm1, %v609_v7 }
  0x3a   : > { %1765 = vmatmul.msk.f32.gmra.mxu3 %vm273_vm1, %v2183_v20  ;;  %1809 = vmatmul.msk.f32.gmra.mxu2 %vm273_vm1, %v614_v21 }
  0x3b   : > { %1741 = vmatmul.msk.f32.gmra.mxu0 %vm273_vm1, %v612_v17 }
  0x3c   : > { %1774 = vmatmul.msk.f32.gmra.mxu1 %vm273_vm1, %v610_v11 }
  0x42   : > { %1766 = vmatmul.msk.f32.gmra.mxu3 %vm273_vm1, %v2192_v22  ;;  %1810 = vmatmul.msk.f32.gmra.mxu2 %vm273_vm1, %v615_v23 }
  0x43   : > { %1742 = vmatmul.msk.f32.gmra.mxu0 %vm273_vm1, %v613_v19 }
  0x44   : > { %1775 = vmatmul.msk.f32.gmra.mxu1 %vm273_vm1, %v611_v15 }
  0x4a   : > { %1767 = vmatmul.msk.f32.gmra.mxu3 %vm273_vm1, %v2201_v24  ;;  %1811 = vmatmul.msk.f32.gmra.mxu2 %vm273_vm1, %v616_v25 }
  0x4b   : > { %1743 = vmatmul.msk.f32.gmra.mxu0 %vm273_vm1, %v614_v21 }
  0x4c   : > { %1776 = vmatmul.msk.f32.gmra.mxu1 %vm273_vm1, %v612_v17 }
  0x52   : > { %1793 = vmatmul.msk.f32.vlgmr.msrb.gmra.mxu3 %vm273_vm1, %v2210_v26  ;;  %1812 = vmatmul.msk.f32.gmra.mxu2 %vm273_vm1, %v617_v27 }
  0x53   : > { %1744 = vmatmul.msk.f32.gmra.mxu0 %vm273_vm1, %v615_v23 }
  0x54   : > { %1777 = vmatmul.msk.f32.gmra.mxu1 %vm273_vm1, %v613_v19 }
  0x5a   : > { %1794 = vmatmul.msk.f32.gmra.mxu3 %vm273_vm1, %v2219_v28  ;;  %1813 = vmatmul.msk.f32.gmra.mxu2 %vm273_vm1, %v618_v29 }
  0x5b   : > { %1745 = vmatmul.msk.f32.gmra.mxu0 %vm273_vm1, %v616_v25 }
  0x5c   : > { %1778 = vmatmul.msk.f32.gmra.mxu1 %vm273_vm1, %v614_v21 }
  0x62   : > { %1795 = vmatmul.msk.f32.gmra.mxu3 %vm273_vm1, %v2133_v6  ;;  %1814 = vmatmul.msk.f32.gmra.mxu2 %vm273_vm1, %v619_v30 }
  0x63   : > { %1746 = vmatmul.msk.f32.gmra.mxu0 %vm273_vm1, %v617_v27 }
  0x64   : > { %1779 = vmatmul.msk.f32.gmra.mxu1 %vm273_vm1, %v615_v23 }
  0x6a   : > { %1796 = vmatmul.msk.f32.gmra.mxu3 %vm273_vm1, %v2145_v10  ;;  %1815 = vmatmul.msk.f32.gmra.mxu2 %vm273_vm1, %v620_v31 }
  0x6b   : > { %1747 = vmatmul.msk.f32.gmra.mxu0 %vm273_vm1, %v618_v29 }
  0x6c   : > { %1780 = vmatmul.msk.f32.gmra.mxu1 %vm273_vm1, %v616_v25 }
  0x72   : > { %1797 = vmatmul.msk.f32.gmra.mxu3 %vm273_vm1, %v2156_v14  ;;  %1816 = vmatmul.msk.f32.gmra.mxu2 %vm273_vm1, %v621_v32 }
  0x73   : > { %1748 = vmatmul.msk.f32.gmra.mxu0 %vm273_vm1, %v619_v30 }
  0x74   : > { %1781 = vmatmul.msk.f32.gmra.mxu1 %vm273_vm1, %v617_v27 }
  0x7a   : > { %1798 = vmatmul.msk.f32.gmra.mxu3 %vm273_vm1, %v2165_v16  ;;  %1817 = vmatmul.msk.f32.gmra.mxu2 %vm273_vm1, %v622_v33 }
  0x7b   : > { %1749 = vmatmul.msk.f32.gmra.mxu0 %vm273_vm1, %v620_v31 }
  0x7c   : > { %1782 = vmatmul.msk.f32.gmra.mxu1 %vm273_vm1, %v618_v29 }
  0x82   : > { %1799 = vmatmul.msk.f32.gmra.mxu3 %vm273_vm1, %v2174_v18  ;;  %1818 = vmatmul.msk.f32.gmra.mxu2 %vm273_vm1, %v623_v34 }
  0x83   : > { %1750 = vmatmul.msk.f32.gmra.mxu0 %vm273_vm1, %v621_v32 }
  0x84   : > { %1783 = vmatmul.msk.f32.gmra.mxu1 %vm273_vm1, %v619_v30 }
  0x8a   : > { %1800 = vmatmul.msk.f32.gmra.mxu3 %vm273_vm1, %v2183_v20  ;;  %1819 = vmatmul.msk.f32.gmra.mxu2 %vm273_vm1, %v624_v35 }
  0x8b   : > { %1751 = vmatmul.msk.f32.gmra.mxu0 %vm273_vm1, %v622_v33 }
  0x8c   : > { %1784 = vmatmul.msk.f32.gmra.mxu1 %vm273_vm1, %v620_v31 }
  0x90   : > { %v391_v37 = vpop.f32.mrf.mxu0 }
  0x91   : > { %v513_v38 = vpop.f32.mrf.mxu1 }
  0x92   : > { %1820 = vmatmul.msk.f32.gmra.mxu2 %vm273_vm1, %v2264_v36  ;;  %1828 = vmatmul.msk.f32.vlgmr.msra.gmra.mxu3 %vm273_vm1, %v2156_v14  ;;  %v514_v39 = vadd.f32 %v513_v38, %v391_v37 }
  0x93   : > { %1752 = vmatmul.msk.f32.gmra.mxu0 %vm273_vm1, %v623_v34 }
  0x94   : > { %1785 = vmatmul.msk.f32.gmra.mxu1 %vm273_vm1, %v621_v32 }
  0x95   : > { %v2277_v41 = vpop.f32.mrf.mxu3  ;;  %v760_v42 = vpop.f32.mrf.mxu2 }
  0x96   : > { %v856_v43 = vadd.f32 %v760_v42, %v514_v39 }
  0x98   : > { %v892_v46 = vmul.f32 %v2275_v40, %v856_v43  ;;  %v394_v47 = vpop.f32.mrf.mxu0 }
  0x99   : > { %v516_v48 = vpop.f32.mrf.mxu1 }
  0x9a   : > { %v2289_v49 = vadd.f32 %v2282_v44, %v892_v46  ;;  %1821 = vmatmul.msk.f32.gmra.mxu2 %vm273_vm1, %v2285_v45  ;;  %1829 = vmatmul.msk.f32.gmra.mxu3 %vm273_vm1, %v2165_v16  ;;  %v517_v50 = vadd.f32 %v516_v48, %v394_v47 }
  0x9b   : > { %1753 = vmatmul.msk.f32.gmra.mxu0 %vm273_vm1, %v624_v35 }
  0x9c   : > { %1786 = vmatmul.msk.f32.gmra.mxu1 %vm273_vm1, %v622_v33  ;;  %v1836_v51 = vmul.f32 -1.442695, %v2289_v49 }
  0x9d   : > { %v2298_v52 = vpop.f32.mrf.mxu3  ;;  %v763_v53 = vpop.f32.mrf.mxu2 }
  0x9e   : > { %1904 = vpow2.f32 %v1836_v51  ;;  %v857_v54 = vadd.f32 %v763_v53, %v517_v50 }
  0xa0   : > { %v893_v56 = vmul.f32 %v2275_v40, %v857_v54  ;;  %v397_v57 = vpop.f32.mrf.mxu0 }
  0xa1   : > { %v519_v58 = vpop.f32.mrf.mxu1 }
  0xa2   : > { %v2305_v59 = vadd.f32 %v2282_v44, %v893_v56  ;;  %1822 = vmatmul.msk.f32.gmra.mxu2 %vm273_vm1, %v2301_v55  ;;  %1830 = vmatmul.msk.f32.gmra.mxu3 %vm273_vm1, %v2174_v18  ;;  %v520_v60 = vadd.f32 %v519_v58, %v397_v57 }
  0xa3   : > { %1754 = vmatmul.msk.f32.gmra.mxu0 %vm273_vm1, %v2264_v36 }
  0xa4   : > { %1787 = vmatmul.msk.f32.gmra.mxu1 %vm273_vm1, %v623_v34  ;;  %v1905_v61 = vpop.eup %1904  ;;  %v1837_v62 = vmul.f32 -1.442695, %v2305_v59 }
  0xa5   : > { %v1056_v63 = vadd.f32 1.0, %v1905_v61  ;;  %v2315_v0 = vpop.f32.mrf.mxu3  ;;  %v766_v1 = vpop.f32.mrf.mxu2 }
  0xa6   : > { %1906 = vpow2.f32 %v1837_v62  ;;  %v858_v2 = vadd.f32 %v766_v1, %v520_v60 }
  0xa7   : > { %1908 = vrcp.f32 %v1056_v63  ;;  %v1099_v25 = vand.u32 2147483648, %v1056_v63  ;;  %v1097_v29 = vand.u32 2147483647, %v1056_v63  ;;  %vm1093_vm3 = vweird.f32 %v1056_v63 }
  0xa8   : > { %v894_v4 = vmul.f32 %v2275_v40, %v858_v2  ;;  %v400_v5 = vpop.f32.mrf.mxu0 }
  0xa9   : > { %v522_v7 = vpop.f32.mrf.mxu1  ;;  %v1100_v37 = vor.u32 1.1754944e-38, %v1099_v25  ;;  %vm1098_vm5 = vcmp.eq.f32.partialorder %v1097_v29, 8.507059e+37 }
  0xaa   : > { %v2322_v8 = vadd.f32 %v2282_v44, %v894_v4  ;;  %1823 = vmatmul.msk.f32.gmra.mxu2 %vm273_vm1, %v2318_v3  ;;  %1831 = vmatmul.msk.f32.gmra.mxu3 %vm273_vm1, %v2183_v20  ;;  %v523_v9 = vadd.f32 %v522_v7, %v400_v5 }
  0xab   : > { %1755 = vmatmul.msk.f32.gmra.mxu0 %vm273_vm1, %v2285_v45 }
  0xac   : > { %1788 = vmatmul.msk.f32.gmra.mxu1 %vm273_vm1, %v624_v35  ;;  %v1907_v11 = vpop.eup %1906  ;;  %v1838_v12 = vmul.f32 -1.442695, %v2322_v8 }
  0xad   : > { %v1909_v13 = vpop.eup %1908  ;;  %v2332_v14 = vadd.f32 1.0, %v1907_v11  ;;  %v2334_v15 = vpop.f32.mrf.mxu3 }
  0xae   : > { %v769_v16 = vpop.f32.mrf.mxu2  ;;  %v1089_v17 = vmul.f32 %v1909_v13, %v1056_v63  ;;  %1910 = vpow2.f32 %v1838_v12  ;;  %vm1094_vm2 = vweird.f32 %v1909_v13 }
  0xaf   : > { %v859_v18 = vadd.f32 %v769_v16, %v523_v9  ;;  %1912 = vrcp.f32 %v2332_v14  ;;  %vm1095_vm4 = vmor %vm1093_vm3, %vm1094_vm2  ;;  %v1114_v53 = vand.u32 2147483648, %v2332_v14  ;;  %v1112_v56 = vand.u32 2147483647, %v2332_v14  ;;  %v639_v9 = vld [vmem:[%s2130_s8 + $0x110] sm:$0xff] }
  0xb0   : > { %v1090_v19 = vsub.f32 1.0, %v1089_v17  ;;  %v403_v21 = vpop.f32.mrf.mxu0  ;;  %vm1108_vm8 = vweird.f32 %v2332_v14 }
  0xb1   : > { %v895_v20 = vmul.f32 %v2275_v40, %v859_v18  ;;  %v525_v23 = vpop.f32.mrf.mxu1  ;;  %v1115_v62 = vor.u32 1.1754944e-38, %v1114_v53  ;;  %vm1113_vm10 = vcmp.eq.f32.partialorder %v1112_v56, 8.507059e+37 }
  0xb2   : > { %v1091_v27 = vmul.f32 %v1909_v13, %v1090_v19  ;;  %1824 = vmatmul.msk.f32.gmra.mxu2 %vm273_vm1, %v2210_v26  ;;  %1832 = vmatmul.msk.f32.gmra.mxu3 %vm273_vm1, %v2192_v22  ;;  %v526_v34 = vadd.f32 %v525_v23, %v403_v21 }
  0xb3   : > { %v2339_v30 = vadd.f32 %v2282_v44, %v895_v20  ;;  %1756 = vmatmul.msk.f32.gmra.mxu0 %vm273_vm1, %v2301_v55 }
  0xb4   : > { %1789 = vmatmul.msk.f32.gmra.mxu1 %vm273_vm1, %v2264_v36  ;;  %v1911_v31 = vpop.eup %1910  ;;  %v1092_v32 = vadd.f32 %v1909_v13, %v1091_v27 }
  0xb5   : > { %v1839_v33 = vmul.f32 -1.442695, %v2339_v30  ;;  %v1913_v35 = vpop.eup %1912  ;;  %v2351_v38 = vadd.f32 1.0, %v1911_v31  ;;  %v2353_v39 = vpop.f32.mrf.mxu3 }
  0xb6   : > { %v772_v22 = vpop.f32.mrf.mxu2  ;;  %v1096_v42 = vsel %vm1095_vm4, %v1909_v13, %v1092_v32  ;;  %v1104_v43 = vmul.f32 %v1913_v35, %v2332_v14  ;;  %vm1109_vm7 = vweird.f32 %v1913_v35 }
  0xb7   : > { %1914 = vpow2.f32 %v1839_v33  ;;  %v1101_v36 = vsel %vm1098_vm5, %v1100_v37, %v1096_v42  ;;  %v860_v48 = vadd.f32 %v772_v22, %v526_v34  ;;  %vm1110_vm9 = vmor %vm1108_vm8, %vm1109_vm7  ;;  %v1129_v16 = vand.u32 2147483648, %v2351_v38  ;;  %v640_v37 = vld [vmem:[%s2130_s8 + $0x118] sm:$0xff] }
  0xb8   : > { %1916 = vrcp.f32 %v2351_v38  ;;  %v1568_v46 = vmul.f32 %v1101_v36, %v2289_v49  ;;  %v1105_v47 = vsub.f32 1.0, %v1104_v43  ;;  %v406_v50 = vpop.f32.mrf.mxu0  ;;  %v1127_v19 = vand.u32 2147483647, %v2351_v38 }
  0xb9   : > { %v528_v51 = vpop.f32.mrf.mxu1  ;;  %v896_v57 = vmul.f32 %v2275_v40, %v860_v48  ;;  %vm1123_vm12 = vweird.f32 %v2351_v38  ;;  %v1130_v25 = vor.u32 1.1754944e-38, %v1129_v16 }
  0xba   : > { %1601 = vst.msk [vmem:[%s2359_s19] sm:$0xff] %vm1600_vm6, %v1568_v46  ;;  %v1106_v54 = vmul.f32 %v1913_v35, %v1105_v47  ;;  %1825 = vmatmul.msk.f32.gmra.mxu2 %vm273_vm1, %v2219_v28  ;;  %1833 = vmatmul.msk.f32.gmra.mxu3 %vm273_vm1, %v2201_v24  ;;  %v529_v24 = vadd.f32 %v528_v51, %v406_v50  ;;  %vm1128_vm14 = vcmp.eq.f32.partialorder %v1127_v19, 8.507059e+37 }
  0xbb   : > { %1757 = vmatmul.msk.f32.gmra.mxu0 %vm273_vm1, %v2318_v3  ;;  %v2378_v60 = vadd.f32 %v2282_v44, %v896_v57 }
  0xbc   : > { %1790 = vmatmul.msk.f32.gmra.mxu1 %vm273_vm1, %v2285_v45  ;;  %v1107_v58 = vadd.f32 %v1913_v35, %v1106_v54 }
  0xbd   : > { %v1915_v49 = vpop.eup %1914  ;;  %v2382_v1 = vpop.f32.mrf.mxu3  ;;  %v1840_v5 = vmul.f32 -1.442695, %v2378_v60 }
  0xbe   : > { %v1917_v61 = vpop.eup %1916  ;;  %v2380_v63 = vadd.f32 1.0, %v1915_v49  ;;  %v775_v2 = vpop.f32.mrf.mxu2  ;;  %v1111_v4 = vsel %vm1110_vm9, %v1913_v35, %v1107_v58 }
  0xbf   : > { %v1119_v45 = vmul.f32 %v1917_v61, %v2351_v38  ;;  %v1116_v7 = vsel %vm1113_vm10, %v1115_v62, %v1111_v4  ;;  %v861_v17 = vadd.f32 %v775_v2, %v529_v24  ;;  %vm1124_vm11 = vweird.f32 %v1917_v61 }
  0xc0   : > { %1918 = vrcp.f32 %v2380_v63  ;;  %v1569_v11 = vmul.f32 %v1116_v7, %v2305_v59  ;;  %v409_v13 = vpop.f32.mrf.mxu0  ;;  %vm1125_vm13 = vmor %vm1123_vm12, %vm1124_vm11  ;;  %v1142_v46 = vand.u32 2147483647, %v2380_v63  ;;  %v1144_v47 = vand.u32 2147483648, %v2380_v63 }
  0xc1   : > { %v1120_v12 = vsub.f32 1.0, %v1119_v45  ;;  %1920 = vpow2.f32 %v1840_v5  ;;  %v531_v14 = vpop.f32.mrf.mxu1  ;;  %v897_v59 = vmul.f32 %v2275_v40, %v861_v17  ;;  %vm1138_vm0 = vweird.f32 %v2380_v63 }
  0xc2   : > { %1602 = vst.msk [vmem:[%s2359_s19 + $0x8] sm:$0xff] %vm1600_vm6, %v1569_v11  ;;  %1826 = vmatmul.msk.f32.gmra.mxu2 %vm273_vm1, %v2133_v6  ;;  %1834 = vmatmul.msk.f32.gmra.mxu3 %vm273_vm1, %v639_v9  ;;  %v532_v20 = vadd.f32 %v531_v14, %v409_v13  ;;  %v1145_v54 = vor.u32 1.1754944e-38, %v1144_v47  ;;  %vm1143_vm3 = vcmp.eq.f32.partialorder %v1142_v46, 8.507059e+37 }
  0xc3   : > { %v1121_v18 = vmul.f32 %v1917_v61, %v1120_v12  ;;  %1758 = vmatmul.msk.f32.gmra.mxu0 %vm273_vm1, %v2210_v26  ;;  %v2403_v6 = vadd.f32 %v2282_v44, %v897_v59 }
  0xc4   : > { %1791 = vmatmul.msk.f32.gmra.mxu1 %vm273_vm1, %v2301_v55 }
  0xc5   : > { %v1122_v21 = vadd.f32 %v1917_v61, %v1121_v18  ;;  %v2405_v27 = vpop.f32.mrf.mxu3  ;;  %v1841_v35 = vmul.f32 -1.442695, %v2403_v6 }
  0xc6   : > { %v1919_v23 = vpop.eup %1918  ;;  %v778_v29 = vpop.f32.mrf.mxu2 }
  0xc7   : > { %v1921_v31 = vpop.eup %1920  ;;  %v1126_v32 = vsel %vm1125_vm13, %v1917_v61, %v1122_v21  ;;  %v1134_v26 = vmul.f32 %v1919_v23, %v2380_v63  ;;  %v862_v55 = vadd.f32 %v778_v29, %v532_v20  ;;  %vm1139_vm15 = vweird.f32 %v1919_v23 }
  0xc8   : > { %v1131_v33 = vsel %vm1128_vm14, %v1130_v25, %v1126_v32  ;;  %v2408_v34 = vadd.f32 1.0, %v1921_v31  ;;  %v412_v43 = vpop.f32.mrf.mxu0  ;;  %vm1140_vm2 = vmor %vm1138_vm0, %vm1139_vm15 }
  0xc9   : > { %v1570_v38 = vmul.f32 %v1131_v33, %v2322_v8  ;;  %v1135_v22 = vsub.f32 1.0, %v1134_v26  ;;  %v898_v42 = vmul.f32 %v2275_v40, %v862_v55  ;;  %v534_v36 = vpop.f32.mrf.mxu1 }
  0xca   : > { %1922 = vrcp.f32 %v2408_v34  ;;  %1827 = vmatmul.msk.f32.gmra.mxu2 %vm273_vm1, %v2145_v10  ;;  %1835 = vmatmul.msk.f32.gmra.mxu3 %vm273_vm1, %v640_v37  ;;  %v535_v8 = vadd.f32 %v534_v36, %v412_v43  ;;  %v1159_v9 = vand.u32 2147483648, %v2408_v34  ;;  %vm1153_vm4 = vweird.f32 %v2408_v34 }
  0xcb   : > { %1603 = vst.msk [vmem:[%s2359_s19 + $0x10] sm:$0xff] %vm1600_vm6, %v1570_v38  ;;  %v1136_v48 = vmul.f32 %v1919_v23, %v1135_v22  ;;  %1924 = vpow2.f32 %v1841_v35  ;;  %v2420_v50 = vadd.f32 %v2282_v44, %v898_v42  ;;  %1759 = vmatmul.msk.f32.gmra.mxu0 %vm273_vm1, %v2219_v28 }
  0xcc   : > { %1792 = vmatmul.msk.f32.gmra.mxu1 %vm273_vm1, %v2318_v3  ;;  %v1160_v20 = vor.u32 1.1754944e-38, %v1159_v9 }
  0xcd   : > { %v1137_v51 = vadd.f32 %v1919_v23, %v1136_v48  ;;  %v1842_v53 = vmul.f32 -1.442695, %v2420_v50  ;;  %v2431_v56 = vpop.f32.mrf.mxu3 }
  0xce   : > { %v781_v10 = vpop.f32.mrf.mxu2 }
  0xcf   : > { %v1141_v57 = vsel %vm1140_vm2, %v1919_v23, %v1137_v51  ;;  %1926 = vpow2.f32 %v1842_v53  ;;  %v863_v49 = vadd.f32 %v781_v10, %v535_v8 }
  0xd0   : > { %v1923_v58 = vpop.eup %1922  ;;  %v1146_v28 = vsel %vm1143_vm3, %v1145_v54, %v1141_v57  ;;  %v415_v24 = vpop.f32.mrf.mxu0 }
  0xd1   : > { %v1925_v61 = vpop.eup %1924  ;;  %v1571_v3 = vmul.f32 %v1146_v28, %v2339_v30  ;;  %v1149_v62 = vmul.f32 %v1923_v58, %v2408_v34  ;;  %v899_v63 = vmul.f32 %v2275_v40, %v863_v49  ;;  %v537_v2 = vpop.f32.mrf.mxu1  ;;  %vm1154_vm1 = vweird.f32 %v1923_v58 }
  0xd2   : > { %v1061_v4 = vadd.f32 1.0, %v1925_v61  ;;  %v538_v7 = vadd.f32 %v537_v2, %v415_v24  ;;  %v1157_v30 = vand.u32 2147483647, %v2408_v34  ;;  %vm1155_vm5 = vmor %vm1153_vm4, %vm1154_vm1 }
  0xd3   : > { %1604 = vst.msk [vmem:[%s2359_s19 + $0x18] sm:$0xff] %vm1600_vm6, %v1571_v3  ;;  %v1150_v45 = vsub.f32 1.0, %v1149_v62  ;;  %v2439_v5 = vadd.f32 %v2282_v44, %v899_v63 }
  0xd4   : > { %1928 = vrcp.f32 %v1061_v4  ;;  %vm1158_vm7 = vcmp.eq.f32.partialorder %v1157_v30, 8.507059e+37  ;;  %v1172_v22 = vand.u32 2147483647, %v1061_v4  ;;  %v1174_v42 = vand.u32 2147483648, %v1061_v4 }
  0xd5   : > { %v1927_v11 = vpop.eup %1926  ;;  %v1151_v12 = vmul.f32 %v1923_v58, %v1150_v45  ;;  %v1843_v13 = vmul.f32 -1.442695, %v2439_v5  ;;  %v2446_v16 = vpop.f32.mrf.mxu3  ;;  %vm1168_vm9 = vweird.f32 %v1061_v4 }
  0xd6   : > { %v2444_v14 = vadd.f32 1.0, %v1927_v11  ;;  %v784_v17 = vpop.f32.mrf.mxu2  ;;  %vm1173_vm11 = vcmp.eq.f32.partialorder %v1172_v22, 8.507059e+37  ;;  %v1175_v57 = vor.u32 1.1754944e-38, %v1174_v42 }
  0xd7   : > { %v1152_v18 = vadd.f32 %v1923_v58, %v1151_v12  ;;  %1930 = vpow2.f32 %v1843_v13  ;;  %v864_v19 = vadd.f32 %v784_v17, %v538_v7 }
  0xd8   : > { %1932 = vrcp.f32 %v2444_v14  ;;  %v418_v23 = vpop.f32.mrf.mxu0  ;;  %v1187_v49 = vand.u32 2147483647, %v2444_v14  ;;  %vm1183_vm13 = vweird.f32 %v2444_v14 }
  0xd9   : > { %v1156_v59 = vsel %vm1155_vm5, %v1923_v58, %v1152_v18  ;;  %v900_v21 = vmul.f32 %v2275_v40, %v864_v19  ;;  %v540_v25 = vpop.f32.mrf.mxu1  ;;  %v1189_v58 = vand.u32 2147483648, %v2444_v14 }
  0xda   : > { %v1929_v29 = vpop.eup %1928  ;;  %v1161_v31 = vsel %vm1158_vm7, %v1160_v20, %v1156_v59  ;;  %v541_v37 = vadd.f32 %v540_v25, %v418_v23  ;;  %vm1188_vm15 = vcmp.eq.f32.partialorder %v1187_v49, 8.507059e+37 }
  0xdb   : > { %v1572_v32 = vmul.f32 %v1161_v31, %v2378_v60  ;;  %v1164_v26 = vmul.f32 %v1929_v29, %v1061_v4  ;;  %v2453_v55 = vadd.f32 %v2282_v44, %v900_v21  ;;  %vm1169_vm8 = vweird.f32 %v1929_v29 }
  0xdc   : > { %vm1170_vm10 = vmor %vm1168_vm9, %vm1169_vm8  ;;  %v1190_v45 = vor.u32 1.1754944e-38, %v1189_v58 }
  0xdd   : > { %v1931_v33 = vpop.eup %1930  ;;  %1605 = vst.msk [vmem:[%s2359_s19 + $0x20] sm:$0xff] %vm1600_vm6, %v1572_v32  ;;  %v1165_v34 = vsub.f32 1.0, %v1164_v26  ;;  %v1844_v35 = vmul.f32 -1.442695, %v2453_v55  ;;  %v588_v36 = vpop.f32.mrf.mxu3 }
  0xde   : > { %v1933_v38 = vpop.eup %1932  ;;  %v2458_v43 = vadd.f32 1.0, %v1931_v33  ;;  %v787_v46 = vpop.f32.mrf.mxu2  ;;  %v2463_v51 = vadd.f32 %v588_v36, %v2298_v52 }
  0xdf   : > { %v1166_v47 = vmul.f32 %v1929_v29, %v1165_v34  ;;  %v1179_v60 = vmul.f32 %v1933_v38, %v2444_v14  ;;  %1934 = vpow2.f32 %v1844_v35  ;;  %v865_v53 = vadd.f32 %v787_v46, %v541_v37 }
  0xe0   : > { %1936 = vrcp.f32 %v2458_v43  ;;  %v421_v54 = vpop.f32.mrf.mxu0  ;;  %vm1184_vm12 = vweird.f32 %v1933_v38  ;;  %v1204_v59 = vand.u32 2147483648, %v2458_v43  ;;  %vm1198_vm2 = vweird.f32 %v2458_v43 }
  0xe1   : > { %v1167_v48 = vadd.f32 %v1929_v29, %v1166_v47  ;;  %v1180_v8 = vsub.f32 1.0, %v1179_v60  ;;  %v543_v10 = vpop.f32.mrf.mxu1  ;;  %v901_v3 = vmul.f32 %v2275_v40, %v865_v53  ;;  %vm1185_vm14 = vmor %vm1183_vm13, %vm1184_vm12 }
  0xe2   : > { %v544_v9 = vadd.f32 %v543_v10, %v421_v54  ;;  %v1205_v33 = vor.u32 1.1754944e-38, %v1204_v59 }
  0xe3   : > { %v1171_v28 = vsel %vm1170_vm10, %v1929_v29, %v1167_v48  ;;  %v1181_v61 = vmul.f32 %v1933_v38, %v1180_v8  ;;  %v2471_v2 = vadd.f32 %v2282_v44, %v901_v3  ;;  %v1202_v29 = vand.u32 2147483647, %v2458_v43 }
  0xe4   : > { %v1176_v62 = vsel %vm1173_vm11, %v1175_v57, %v1171_v28 }
  0xe5   : > { %v1935_v63 = vpop.eup %1934  ;;  %v1573_v52 = vmul.f32 %v1176_v62, %v2403_v6  ;;  %v1182_v24 = vadd.f32 %v1933_v38, %v1181_v61  ;;  %v591_v11 = vpop.f32.mrf.mxu3  ;;  %v1845_v13 = vmul.f32 -1.442695, %v2471_v2  ;;  %vm1203_vm1 = vcmp.eq.f32.partialorder %v1202_v29, 8.507059e+37 }
  0xe6   : > { %v1937_v4 = vpop.eup %1936  ;;  %v1064_v7 = vadd.f32 1.0, %v1935_v63  ;;  %v790_v12 = vpop.f32.mrf.mxu2  ;;  %v2480_v21 = vadd.f32 %v591_v11, %v2315_v0 }
  0xe7   : > { %1606 = vst.msk [vmem:[%s2359_s19 + $0x28] sm:$0xff] %vm1600_vm6, %v1573_v52  ;;  %v1186_v30 = vsel %vm1185_vm14, %v1933_v38, %v1182_v24  ;;  %v1194_v6 = vmul.f32 %v1937_v4, %v2458_v43  ;;  %v866_v23 = vadd.f32 %v790_v12, %v544_v9  ;;  %vm1199_vm0 = vweird.f32 %v1937_v4 }
  0xe8   : > { %v1191_v14 = vsel %vm1188_vm15, %v1190_v45, %v1186_v30  ;;  %1938 = vrcp.f32 %v1064_v7  ;;  %v424_v19 = vpop.f32.mrf.mxu0  ;;  %vm1200_vm3 = vmor %vm1198_vm2, %vm1199_vm0  ;;  %v1217_v54 = vand.u32 2147483647, %v1064_v7  ;;  %v1219_v10 = vand.u32 2147483648, %v1064_v7 }
  0xe9   : > { %v1574_v17 = vmul.f32 %v1191_v14, %v2420_v50  ;;  %v1195_v18 = vsub.f32 1.0, %v1194_v6  ;;  %1940 = vpow2.f32 %v1845_v13  ;;  %v546_v20 = vpop.f32.mrf.mxu1  ;;  %v902_v31 = vmul.f32 %v2275_v40, %v866_v23 }
  0xea   : > { %v547_v32 = vadd.f32 %v546_v20, %v424_v19  ;;  %vm1213_vm5 = vweird.f32 %v1064_v7  ;;  %vm1218_vm8 = vcmp.eq.f32.partialorder %v1217_v54, 8.507059e+37 }
  0xeb   : > { %1607 = vst.msk [vmem:[%s2359_s19 + $0x30] sm:$0xff] %vm1600_vm6, %v1574_v17  ;;  %v1196_v25 = vmul.f32 %v1937_v4, %v1195_v18  ;;  %v2488_v34 = vadd.f32 %v2282_v44, %v902_v31 }
  0xed   : > { %v1197_v50 = vadd.f32 %v1937_v4, %v1196_v25  ;;  %v594_v0 = vpop.f32.mrf.mxu3  ;;  %v1846_v43 = vmul.f32 -1.442695, %v2488_v34 }
  0xee   : > { %v1939_v26 = vpop.eup %1938  ;;  %v793_v35 = vpop.f32.mrf.mxu2  ;;  %v2491_v42 = vadd.f32 %v594_v0, %v2334_v15 }
  0xef   : > { %v1941_v37 = vpop.eup %1940  ;;  %v1201_v38 = vsel %vm1200_vm3, %v1937_v4, %v1197_v50  ;;  %v1209_v22 = vmul.f32 %v1939_v26, %v1064_v7  ;;  %v867_v47 = vadd.f32 %v793_v35, %v547_v32  ;;  %vm1214_vm4 = vweird.f32 %v1939_v26 }
  0xf0   : > { %v1206_v36 = vsel %vm1203_vm1, %v1205_v33, %v1201_v38  ;;  %v1065_v46 = vadd.f32 1.0, %v1941_v37  ;;  %v427_v8 = vpop.f32.mrf.mxu0  ;;  %vm1215_vm7 = vmor %vm1213_vm5, %vm1214_vm4 }
  0xf1   : > { %v1575_v60 = vmul.f32 %v1206_v36, %v2439_v5  ;;  %v1210_v48 = vsub.f32 1.0, %v1209_v22  ;;  %v549_v53 = vpop.f32.mrf.mxu1  ;;  %v903_v15 = vmul.f32 %v2275_v40, %v867_v47  ;;  %v1220_v5 = vor.u32 1.1754944e-38, %v1219_v10 }
  0xf2   : > { %1942 = vrcp.f32 %v1065_v46  ;;  %v550_v49 = vadd.f32 %v549_v53, %v427_v8  ;;  %v1234_v18 = vand.u32 2147483648, %v1065_v46  ;;  %v1232_v19 = vand.u32 2147483647, %v1065_v46 }
  0xf3   : > { %1608 = vst.msk [vmem:[%s2359_s19 + $0x38] sm:$0xff] %vm1600_vm6, %v1575_v60  ;;  %v1211_v57 = vmul.f32 %v1939_v26, %v1210_v48  ;;  %1944 = vpow2.f32 %v1846_v43  ;;  %v2499_v28 = vadd.f32 %v2282_v44, %v903_v15  ;;  %vm1228_vm10 = vweird.f32 %v1065_v46 }
  0xf4   : > { %v1235_v50 = vor.u32 1.1754944e-38, %v1234_v18  ;;  %vm1233_vm12 = vcmp.eq.f32.partialorder %v1232_v19, 8.507059e+37 }
  0xf5   : > { %v1212_v58 = vadd.f32 %v1939_v26, %v1211_v57  ;;  %v597_v61 = vpop.f32.mrf.mxu3  ;;  %v1847_v63 = vmul.f32 -1.442695, %v2499_v28 }
  0xf6   : > { %v796_v3 = vpop.f32.mrf.mxu2  ;;  %v2503_v52 = vadd.f32 %v597_v61, %v2353_v39 }
  0xf7   : > { %v1216_v62 = vsel %vm1215_vm7, %v1939_v26, %v1212_v58  ;;  %v868_v24 = vadd.f32 %v796_v3, %v550_v49  ;;  %1946 = vpow2.f32 %v1847_v63 }
  0xf8   : > { %v1943_v4 = vpop.eup %1942  ;;  %v1221_v45 = vsel %vm1218_vm8, %v1220_v5, %v1216_v62  ;;  %v430_v12 = vpop.f32.mrf.mxu0 }
  0xf9   : > { %v1945_v9 = vpop.eup %1944  ;;  %v1576_v7 = vmul.f32 %v1221_v45, %v2453_v55  ;;  %v1224_v11 = vmul.f32 %v1943_v4, %v1065_v46  ;;  %v552_v30 = vpop.f32.mrf.mxu1  ;;  %v904_v13 = vmul.f32 %v2275_v40, %v868_v24  ;;  %vm1229_vm9 = vweird.f32 %v1943_v4 }
  0xfa   : > { %v1066_v6 = vadd.f32 1.0, %v1945_v9  ;;  %v553_v17 = vadd.f32 %v552_v30, %v430_v12  ;;  %vm1230_vm11 = vmor %vm1228_vm10, %vm1229_vm9 }
  0xfb   : > { %1609 = vst.msk [vmem:[%s2359_s19 + $0x40] sm:$0xff] %vm1600_vm6, %v1576_v7  ;;  %v1225_v14 = vsub.f32 1.0, %v1224_v11  ;;  %v2510_v20 = vadd.f32 %v2282_v44, %v904_v13 }
  0xfc   : > { %1948 = vrcp.f32 %v1066_v6  ;;  %v1247_v60 = vand.u32 2147483647, %v1066_v6  ;;  %v1249_v48 = vand.u32 2147483648, %v1066_v6  ;;  %vm1243_vm14 = vweird.f32 %v1066_v6 }
  0xfd   : > { %v1226_v39 = vmul.f32 %v1943_v4, %v1225_v14  ;;  %v600_v55 = vpop.f32.mrf.mxu3  ;;  %v1947_v23 = vpop.eup %1946  ;;  %v1848_v29 = vmul.f32 -1.442695, %v2510_v20 }
  0xfe   : > { %v799_v59 = vpop.f32.mrf.mxu2  ;;  %v2514_v31 = vadd.f32 %v600_v55, %v2382_v1  ;;  %v2516_v26 = vadd.f32 1.0, %v1947_v23  ;;  %v1250_v24 = vor.u32 1.1754944e-38, %v1249_v48  ;;  %vm1248_vm0 = vcmp.eq.f32.partialorder %v1247_v60, 8.507059e+37 }
  0xff   : > { %v1227_v25 = vadd.f32 %v1943_v4, %v1226_v39  ;;  %v869_v32 = vadd.f32 %v799_v59, %v553_v17  ;;  %1950 = vpow2.f32 %v1848_v29 }
 0x100   : > { %v433_v35 = vpop.f32.mrf.mxu0  ;;  %1952 = vrcp.f32 %v2516_v26  ;;  %v1262_v7 = vand.u32 2147483647, %v2516_v26  ;;  %v1264_v11 = vand.u32 2147483648, %v2516_v26  ;;  %vm1258_vm3 = vweird.f32 %v2516_v26 }
 0x101   : > { %v1231_v33 = vsel %vm1230_vm11, %v1943_v4, %v1227_v25  ;;  %v905_v0 = vmul.f32 %v2275_v40, %v869_v32  ;;  %v555_v37 = vpop.f32.mrf.mxu1 }
 0x102   : > { %v1949_v38 = vpop.eup %1948  ;;  %v1236_v22 = vsel %vm1233_vm12, %v1235_v50, %v1231_v33  ;;  %v556_v43 = vadd.f32 %v555_v37, %v433_v35  ;;  %vm1263_vm4 = vcmp.eq.f32.partialorder %v1262_v7, 8.507059e+37  ;;  %v586_v37 = vadd.f32 %v2446_v16, %v2277_v41 }
 0x103   : > { %v1577_v1 = vmul.f32 %v1236_v22, %v2471_v2  ;;  %v1239_v36 = vmul.f32 %v1949_v38, %v1066_v6  ;;  %v2522_v46 = vadd.f32 %v2282_v44, %v905_v0  ;;  %vm1244_vm13 = vweird.f32 %v1949_v38 }
 0x104   : > { %vm1245_vm15 = vmor %vm1243_vm14, %vm1244_vm13 }
 0x105   : > { %1610 = vst.msk [vmem:[%s2359_s19 + $0x48] sm:$0xff] %vm1600_vm6, %v1577_v1  ;;  %v1240_v47 = vsub.f32 1.0, %v1239_v36  ;;  %v1849_v8 = vmul.f32 -1.442695, %v2522_v46  ;;  %v603_v53 = vpop.f32.mrf.mxu3  ;;  %v1951_v10 = vpop.eup %1950 }
 0x106   : > { %v802_v54 = vpop.f32.mrf.mxu2  ;;  %v2528_v15 = vadd.f32 %v603_v53, %v2405_v27  ;;  %v1953_v49 = vpop.eup %1952  ;;  %v2530_v58 = vadd.f32 1.0, %v1951_v10 }
 0x107   : > { %v1241_v57 = vmul.f32 %v1949_v38, %v1240_v47  ;;  %v870_v2 = vadd.f32 %v802_v54, %v556_v43  ;;  %1954 = vpow2.f32 %v1849_v8  ;;  %v1254_v61 = vmul.f32 %v1953_v49, %v2516_v26 }
 0x108   : > { %v436_v62 = vpop.f32.mrf.mxu0  ;;  %1956 = vrcp.f32 %v2530_v58  ;;  %vm1259_vm2 = vweird.f32 %v1953_v49  ;;  %v1277_v36 = vand.u32 2147483647, %v2530_v58  ;;  %vm1273_vm7 = vweird.f32 %v2530_v58 }
 0x109   : > { %v1242_v5 = vadd.f32 %v1949_v38, %v1241_v57  ;;  %v906_v3 = vmul.f32 %v2275_v40, %v870_v2  ;;  %v558_v63 = vpop.f32.mrf.mxu1  ;;  %v1255_v27 = vsub.f32 1.0, %v1254_v61  ;;  %vm1260_vm1 = vmor %vm1258_vm3, %vm1259_vm2 }
 0x10a   : > { %v559_v12 = vadd.f32 %v558_v63, %v436_v62  ;;  %vm1278_vm9 = vcmp.eq.f32.partialorder %v1277_v36, 8.507059e+37 }
 0x10b   : > { %v1246_v4 = vsel %vm1245_vm15, %v1949_v38, %v1242_v5  ;;  %v2536_v45 = vadd.f32 %v2282_v44, %v906_v3  ;;  %v1256_v6 = vmul.f32 %v1953_v49, %v1255_v27  ;;  %v1279_v38 = vand.u32 2147483648, %v2530_v58 }
 0x10c   : > { %v1251_v9 = vsel %vm1248_vm0, %v1250_v24, %v1246_v4 }
 0x10d   : > { %v1578_v30 = vmul.f32 %v1251_v9, %v2488_v34  ;;  %v1850_v13 = vmul.f32 -1.442695, %v2536_v45  ;;  %v1955_v14 = vpop.eup %1954  ;;  %v606_v17 = vpop.f32.mrf.mxu3  ;;  %v1257_v39 = vadd.f32 %v1953_v49, %v1256_v6  ;;  %v1265_v34 = vor.u32 1.1754944e-38, %v1264_v11 }
 0x10e   : > { %v805_v18 = vpop.f32.mrf.mxu2  ;;  %v2545_v19 = vadd.f32 1.0, %v1955_v14  ;;  %v2548_v55 = vadd.f32 %v606_v17, %v2431_v56  ;;  %v1957_v59 = vpop.eup %1956  ;;  %v1280_v54 = vor.u32 1.1754944e-38, %v1279_v38 }
 0x10f   : > { %1611 = vst.msk [vmem:[%s2359_s19 + $0x50] sm:$0xff] %vm1600_vm6, %v1578_v30  ;;  %1958 = vpow2.f32 %v1850_v13  ;;  %v871_v23 = vadd.f32 %v805_v18, %v559_v12  ;;  %v1261_v25 = vsel %vm1260_vm1, %v1953_v49, %v1257_v39  ;;  %v1269_v29 = vmul.f32 %v1957_v59, %v2530_v58 }
 0x110   : > { %1960 = vrcp.f32 %v2545_v19  ;;  %v439_v32 = vpop.f32.mrf.mxu0  ;;  %v1266_v26 = vsel %vm1263_vm4, %v1265_v34, %v1261_v25  ;;  %vm1274_vm5 = vweird.f32 %v1957_v59  ;;  %v1292_v63 = vand.u32 2147483647, %v2545_v19 }
 0x111   : > { %v561_v50 = vpop.f32.mrf.mxu1  ;;  %v1579_v33 = vmul.f32 %v1266_v26, %v2499_v28  ;;  %v1270_v0 = vsub.f32 1.0, %v1269_v29  ;;  %v907_v56 = vmul.f32 %v2275_v40, %v871_v23  ;;  %vm1275_vm8 = vmor %vm1273_vm7, %vm1274_vm5  ;;  %v1294_v24 = vand.u32 2147483648, %v2545_v19 }
 0x112   : > { %v562_v35 = vadd.f32 %v561_v50, %v439_v32  ;;  %vm1288_vm11 = vweird.f32 %v2545_v19  ;;  %vm1293_vm13 = vcmp.eq.f32.partialorder %v1292_v63, 8.507059e+37 }
 0x113   : > { %1612 = vst.msk [vmem:[%s2359_s19 + $0x58] sm:$0xff] %vm1600_vm6, %v1579_v33  ;;  %v1271_v1 = vmul.f32 %v1957_v59, %v1270_v0  ;;  %v2561_v43 = vadd.f32 %v2282_v44, %v907_v56  ;;  %v1295_v17 = vor.u32 1.1754944e-38, %v1294_v24 }
 0x115   : > { %v1959_v22 = vpop.eup %1958  ;;  %v832_v60 = vpop.f32.mrf.mxu3  ;;  %v1272_v41 = vadd.f32 %v1957_v59, %v1271_v1  ;;  %v1851_v16 = vmul.f32 -1.442695, %v2561_v43 }
 0x116   : > { %v2564_v28 = vadd.f32 1.0, %v1959_v22  ;;  %v808_v47 = vpop.f32.mrf.mxu2  ;;  %v1961_v48 = vpop.eup %1960  ;;  %v880_v53 = vadd.f32 %v832_v60, %v586_v37 }
 0x117   : > { %v872_v8 = vadd.f32 %v808_v47, %v562_v35  ;;  %v1284_v10 = vmul.f32 %v1961_v48, %v2545_v19  ;;  %v1276_v57 = vsel %vm1275_vm8, %v1957_v59, %v1272_v41  ;;  %vm1289_vm10 = vweird.f32 %v1961_v48 }
 0x118   : > { %1962 = vrcp.f32 %v2564_v28  ;;  %v442_v2 = vpop.f32.mrf.mxu0  ;;  %v1281_v58 = vsel %vm1278_vm9, %v1280_v54, %v1276_v57  ;;  %v916_v3 = vmul.f32 %v2275_v40, %v880_v53  ;;  %vm1290_vm12 = vmor %vm1288_vm11, %vm1289_vm10  ;;  %v1307_v33 = vand.u32 2147483647, %v2564_v28 }
 0x119   : > { %1964 = vpow2.f32 %v1851_v16  ;;  %v564_v49 = vpop.f32.mrf.mxu1  ;;  %v1285_v5 = vsub.f32 1.0, %v1284_v10  ;;  %v908_v61 = vmul.f32 %v2275_v40, %v872_v8  ;;  %v1580_v62 = vmul.f32 %v1281_v58, %v2510_v20 }
 0x11a   : > { %v565_v4 = vadd.f32 %v564_v49, %v442_v2  ;;  %v2578_v7 = vadd.f32 %v2282_v44, %v916_v3  ;;  %v1309_v0 = vand.u32 2147483648, %v2564_v28  ;;  %vm1303_vm15 = vweird.f32 %v2564_v28 }
 0x11b   : > { %v1286_v27 = vmul.f32 %v1961_v48, %v1285_v5  ;;  %v2575_v9 = vadd.f32 %v2282_v44, %v908_v61  ;;  %1613 = vst.msk [vmem:[%s2359_s19 + $0x60] sm:$0xff] %vm1600_vm6, %v1580_v62  ;;  %vm1308_vm2 = vcmp.eq.f32.partialorder %v1307_v33, 8.507059e+37 }
 0x11c   : > { %v1860_v30 = vmul.f32 -1.442695, %v2578_v7  ;;  %v1310_v36 = vor.u32 1.1754944e-38, %v1309_v0 }
 0x11d   : > { %v1287_v12 = vadd.f32 %v1961_v48, %v1286_v27  ;;  %v1852_v20 = vmul.f32 -1.442695, %v2575_v9  ;;  %v835_v13 = vpop.f32.mrf.mxu3 }
 0x11e   : > { %v1963_v11 = vpop.eup %1962  ;;  %v811_v6 = vpop.f32.mrf.mxu2  ;;  %v881_v59 = vadd.f32 %v835_v13, %v2463_v51 }
 0x11f   : > { %v1965_v14 = vpop.eup %1964  ;;  %v1299_v18 = vmul.f32 %v1963_v11, %v2564_v28  ;;  %v873_v39 = vadd.f32 %v811_v6, %v565_v4  ;;  %v1291_v34 = vsel %vm1290_vm12, %v1961_v48, %v1287_v12  ;;  %1966 = vpow2.f32 %v1852_v20  ;;  %v2638_v20 = vld [vmem:[%s2918_s3] ss:$0 sm:$0xff] }
 0x120   : > { %v2587_v23 = vadd.f32 1.0, %v1965_v14  ;;  %v1296_v19 = vsel %vm1293_vm13, %v1295_v17, %v1291_v34  ;;  %1968 = vpow2.f32 %v1860_v30  ;;  %v445_v32 = vpop.f32.mrf.mxu0  ;;  %vm1304_vm14 = vweird.f32 %v1963_v11 }
 0x121   : > { %v1300_v25 = vsub.f32 1.0, %v1299_v18  ;;  %v909_v29 = vmul.f32 %v2275_v40, %v873_v39  ;;  %v567_v50 = vpop.f32.mrf.mxu1  ;;  %v1581_v26 = vmul.f32 %v1296_v19, %v2522_v46  ;;  %v917_v35 = vmul.f32 %v2275_v40, %v881_v59  ;;  %vm1305_vm0 = vmor %vm1303_vm15, %vm1304_vm14 }
 0x122   : > { %1970 = vrcp.f32 %v2587_v23  ;;  %v568_v37 = vadd.f32 %v567_v50, %v445_v32  ;;  %v1322_v58 = vand.u32 2147483647, %v2587_v23  ;;  %v1324_v5 = vand.u32 2147483648, %v2587_v23 }
 0x123   : > { %v1301_v51 = vmul.f32 %v1963_v11, %v1300_v25  ;;  %v2595_v56 = vadd.f32 %v2282_v44, %v909_v29  ;;  %1614 = vst.msk [vmem:[%s2359_s19 + $0x68] sm:$0xff] %vm1600_vm6, %v1581_v26  ;;  %v2603_v22 = vadd.f32 %v2282_v44, %v917_v35  ;;  %vm1318_vm3 = vweird.f32 %v2587_v23 }
 0x124   : > { %vm2629_vm4 = vcmp.eq.f32.partialorder %v1322_v58, 8.507059e+37 }
 0x125   : > { %v1302_v38 = vadd.f32 %v1963_v11, %v1301_v51  ;;  %v1853_v46 = vmul.f32 -1.442695, %v2595_v56  ;;  %v1967_v1 = vpop.eup %1966  ;;  %v838_v60 = vpop.f32.mrf.mxu3  ;;  %v1861_v53 = vmul.f32 -1.442695, %v2603_v22 }
 0x126   : > { %v814_v47 = vpop.f32.mrf.mxu2  ;;  %v1969_v48 = vpop.eup %1968  ;;  %v2605_v40 = vadd.f32 1.0, %v1967_v1  ;;  %v882_v57 = vadd.f32 %v838_v60, %v2480_v21 }
 0x127   : > { %v1306_v41 = vsel %vm1305_vm0, %v1963_v11, %v1302_v38  ;;  %1972 = vpow2.f32 %v1853_v46  ;;  %v2607_v28 = vadd.f32 1.0, %v1969_v48  ;;  %v874_v44 = vadd.f32 %v814_v47, %v568_v37 }
 0x128   : > { %v1971_v16 = vpop.eup %1970  ;;  %v1311_v8 = vsel %vm1308_vm2, %v1310_v36, %v1306_v41  ;;  %1974 = vrcp.f32 %v2605_v40  ;;  %v448_v2 = vpop.f32.mrf.mxu0  ;;  %v1337_v63 = vand.u32 2147483647, %v2605_v40  ;;  %v1339_v24 = vand.u32 2147483648, %v2605_v40 }
 0x129   : > { %v1582_v54 = vmul.f32 %v1311_v8, %v2536_v45  ;;  %v1314_v10 = vmul.f32 %v1971_v16, %v2587_v23  ;;  %v570_v49 = vpop.f32.mrf.mxu1  ;;  %1976 = vrcp.f32 %v2607_v28  ;;  %vm1319_vm1 = vweird.f32 %v1971_v16  ;;  %v2623_v45 = vld [vmem:[%s2917_s2] ss:$0 sm:$0xff] }
 0x12a   : > { %1978 = vpow2.f32 %v1861_v53  ;;  %v910_v21 = vmul.f32 %v2623_v45, %v874_v44  ;;  %v918_v4 = vmul.f32 %v2623_v45, %v882_v57  ;;  %v1325_v11 = vor.u32 1.1754944e-38, %v1324_v5  ;;  %vm1320_vm8 = vmor %vm1318_vm3, %vm1319_vm1 }
 0x12b   : > { %1615 = vst.msk [vmem:[%s2359_s19 + $0x70] sm:$0xff] %vm1600_vm6, %v1582_v54  ;;  %v1315_v61 = vsub.f32 1.0, %v1314_v10  ;;  %vm1333_vm5 = vweird.f32 %v2605_v40  ;;  %vm1453_vm7 = vweird.f32 %v2607_v28  ;;  %v1457_v18 = vand.u32 2147483647, %v2607_v28 }
 0x12c   : > { %v2641_v30 = vadd.f32 %v2638_v20, %v910_v21  ;;  %v1459_v34 = vand.u32 2147483648, %v2607_v28  ;;  %v2653_v19 = vadd.f32 %v2638_v20, %v918_v4  ;;  %vm2655_vm9 = vcmp.eq.f32.partialorder %v1337_v63, 8.507059e+37 }
 0x12d   : > { %v1973_v3 = vpop.eup %1972  ;;  %v1316_v62 = vmul.f32 %v1971_v16, %v1315_v61  ;;  %v841_v13 = vpop.f32.mrf.mxu3  ;;  %v1340_v32 = vor.u32 1.1754944e-38, %v1339_v24  ;;  %v571_v51 = vadd.f32 %v570_v49, %v448_v2  ;;  %vm2670_vm12 = vcmp.eq.f32.partialorder %v1457_v18, 8.507059e+37 }
 0x12e   : > { %v2633_v12 = vadd.f32 1.0, %v1973_v3  ;;  %v817_v6 = vpop.f32.mrf.mxu2  ;;  %v1975_v14 = vpop.eup %1974  ;;  %v1854_v0 = vmul.f32 -1.442695, %v2641_v30  ;;  %v883_v46 = vadd.f32 %v841_v13, %v2491_v42  ;;  %v1862_v60 = vmul.f32 -1.442695, %v2653_v19 }
 0x12f   : > { %v1317_v17 = vadd.f32 %v1971_v16, %v1316_v62  ;;  %v1977_v39 = vpop.eup %1976  ;;  %v1329_v59 = vmul.f32 %v1975_v14, %v2605_v40  ;;  %vm1334_vm10 = vweird.f32 %v1975_v14  ;;  %v1460_v42 = vor.u32 1.1754944e-38, %v1459_v34 }
 0x130   : > { %1980 = vrcp.f32 %v2633_v12  ;;  %v1449_v50 = vmul.f32 %v1977_v39, %v2607_v28  ;;  %v1979_v23 = vpop.eup %1978  ;;  %v451_v1 = vpop.f32.mrf.mxu0  ;;  %vm1454_vm11 = vweird.f32 %v1977_v39  ;;  %v875_v8 = vadd.f32 %v817_v6, %v571_v51  ;;  %vm1335_vm13 = vmor %vm1333_vm5, %vm1334_vm10 }
 0x131   : > { %v1321_v25 = vsel %vm1320_vm8, %v1971_v16, %v1317_v17  ;;  %v1330_v33 = vsub.f32 1.0, %v1329_v59  ;;  %v2664_v38 = vadd.f32 1.0, %v1979_v23  ;;  %v573_v36 = vpop.f32.mrf.mxu1  ;;  %1982 = vpow2.f32 %v1854_v0  ;;  %vm1455_vm14 = vmor %vm1453_vm7, %vm1454_vm11 }
 0x132   : > { %v1326_v26 = vsel %vm2629_vm4, %v1325_v11, %v1321_v25  ;;  %v1450_v37 = vsub.f32 1.0, %v1449_v50  ;;  %v1352_v54 = vand.u32 2147483647, %v2633_v12  ;;  %v1354_v10 = vand.u32 2147483648, %v2633_v12 }
 0x133   : > { %v1583_v35 = vmul.f32 %v1326_v26, %v2561_v43  ;;  %v1331_v47 = vmul.f32 %v1975_v14, %v1330_v33  ;;  %1984 = vrcp.f32 %v2664_v38  ;;  %v911_v49 = vmul.f32 %v2623_v45, %v875_v8 }
 0x134   : > { %v1451_v48 = vmul.f32 %v1977_v39, %v1450_v37  ;;  %1986 = vpow2.f32 %v1862_v60  ;;  %v919_v58 = vmul.f32 %v2623_v45, %v883_v46  ;;  %v574_v3 = vadd.f32 %v573_v36, %v451_v1 }
 0x135   : > { %1616 = vst.msk [vmem:[%s2359_s19 + $0x78] sm:$0xff] %vm1600_vm6, %v1583_v35  ;;  %v1332_v16 = vadd.f32 %v1975_v14, %v1331_v47  ;;  %v844_v40 = vpop.f32.mrf.mxu3  ;;  %v2691_v24 = vadd.f32 %v2638_v20, %v911_v49  ;;  %vm1348_vm0 = vweird.f32 %v2633_v12  ;;  %v1355_v34 = vor.u32 1.1754944e-38, %v1354_v10 }
 0x136   : > { %v1981_v43 = vpop.eup %1980  ;;  %v1452_v53 = vadd.f32 %v1977_v39, %v1451_v48  ;;  %v820_v57 = vpop.f32.mrf.mxu2  ;;  %v2694_v4 = vadd.f32 %v2638_v20, %v919_v58  ;;  %vm1353_vm3 = vcmp.eq.f32.partialorder %v1352_v54, 8.507059e+37  ;;  %vm1468_vm4 = vweird.f32 %v2664_v38 }
 0x137   : > { %v1344_v44 = vmul.f32 %v1981_v43, %v2633_v12  ;;  %v1336_v2 = vsel %vm1335_vm13, %v1975_v14, %v1332_v16  ;;  %vm1349_vm15 = vweird.f32 %v1981_v43  ;;  %v1983_v62 = vpop.eup %1982  ;;  %v876_v14 = vadd.f32 %v820_v57, %v574_v3 }
 0x138   : > { %v1341_v5 = vsel %vm2655_vm9, %v1340_v32, %v1336_v2  ;;  %v1456_v61 = vsel %vm1455_vm14, %v1977_v39, %v1452_v53  ;;  %v2697_v13 = vadd.f32 1.0, %v1983_v62  ;;  %v1855_v18 = vmul.f32 -1.442695, %v2691_v24  ;;  %v454_v25 = vpop.f32.mrf.mxu0  ;;  %vm1350_vm2 = vmor %vm1348_vm0, %vm1349_vm15 }
 0x139   : > { %v1345_v21 = vsub.f32 1.0, %v1344_v44  ;;  %v1584_v63 = vmul.f32 %v1341_v5, %v2575_v9  ;;  %v1461_v28 = vsel %vm2670_vm12, %v1460_v42, %v1456_v61  ;;  %v1985_v27 = vpop.eup %1984  ;;  %v1863_v39 = vmul.f32 -1.442695, %v2694_v4  ;;  %v576_v29 = vpop.f32.mrf.mxu1 }
 0x13a   : > { %v1592_v11 = vmul.f32 %v1461_v28, %v2578_v7  ;;  %v1987_v17 = vpop.eup %1986  ;;  %v1464_v9 = vmul.f32 %v1985_v27, %v2664_v38  ;;  %v1472_v7 = vand.u32 2147483647, %v2664_v38  ;;  %1988 = vrcp.f32 %v2697_v13 }
 0x13b   : > { %v1346_v6 = vmul.f32 %v1981_v43, %v1345_v21  ;;  %1617 = vst.msk [vmem:[%s2359_s19 + $0x80] sm:$0xff] %vm1600_vm6, %v1584_v63  ;;  %v1474_v12 = vand.u32 2147483648, %v2664_v38  ;;  %v2711_v50 = vadd.f32 1.0, %v1987_v17  ;;  %1990 = vpow2.f32 %v1855_v18 }
 0x13c   : > { %1625 = vst.msk [vmem:[%s2359_s19 + $0xc0] sm:$0xff] %vm1600_vm6, %v1592_v11  ;;  %v1465_v32 = vsub.f32 1.0, %v1464_v9  ;;  %1992 = vpow2.f32 %v1863_v39  ;;  %v912_v26 = vmul.f32 %v2623_v45, %v876_v14  ;;  %vm1469_vm1 = vweird.f32 %v1985_v27 }
 0x13d   : > { %v1347_v59 = vadd.f32 %v1981_v43, %v1346_v6  ;;  %1994 = vrcp.f32 %v2711_v50  ;;  %vm2717_vm5 = vcmp.eq.f32.partialorder %v1472_v7, 8.507059e+37  ;;  %v1475_v1 = vor.u32 1.1754944e-38, %v1474_v12  ;;  %v847_v60 = vpop.f32.mrf.mxu3  ;;  %vm1470_vm7 = vmor %vm1468_vm4, %vm1469_vm1 }
 0x13e   : > { %v1466_v0 = vmul.f32 %v1985_v27, %v1465_v32  ;;  %v823_v37 = vpop.f32.mrf.mxu2  ;;  %v2722_v36 = vadd.f32 %v2638_v20, %v912_v26  ;;  %v884_v47 = vadd.f32 %v844_v40, %v2503_v52  ;;  %vm1363_vm8 = vweird.f32 %v2697_v13 }
 0x13f   : > { %v1351_v23 = vsel %vm1350_vm2, %v1981_v43, %v1347_v59  ;;  %v1369_v38 = vand.u32 2147483648, %v2697_v13  ;;  %v577_v41 = vadd.f32 %v576_v29, %v454_v25  ;;  %v1487_v8 = vand.u32 2147483647, %v2711_v50 }
 0x140   : > { %v1356_v33 = vsel %vm1353_vm3, %v1355_v34, %v1351_v23  ;;  %v1467_v46 = vadd.f32 %v1985_v27, %v1466_v0  ;;  %v1989_v48 = vpop.eup %1988  ;;  %v1856_v52 = vmul.f32 -1.442695, %v2722_v36  ;;  %v1489_v54 = vand.u32 2147483648, %v2711_v50  ;;  %v457_v3 = vpop.f32.mrf.mxu0 }
 0x141   : > { %v1585_v51 = vmul.f32 %v1356_v33, %v2595_v56  ;;  %v1367_v56 = vand.u32 2147483647, %v2697_v13  ;;  %v1991_v43 = vpop.eup %1990  ;;  %v1359_v42 = vmul.f32 %v1989_v48, %v2697_v13  ;;  %v920_v57 = vmul.f32 %v2623_v45, %v884_v47  ;;  %v579_v62 = vpop.f32.mrf.mxu1 }
 0x142   : > { %v1471_v16 = vsel %vm1470_vm7, %v1985_v27, %v1467_v46  ;;  %v1993_v53 = vpop.eup %1992  ;;  %v2736_v10 = vadd.f32 1.0, %v1991_v43  ;;  %1996 = vpow2.f32 %v1856_v52  ;;  %v877_v21 = vadd.f32 %v823_v37, %v577_v41 }
 0x143   : > { %1618 = vst.msk [vmem:[%s2359_s19 + $0x88] sm:$0xff] %vm1600_vm6, %v1585_v51  ;;  %v1476_v44 = vsel %vm2717_vm5, %v1475_v1, %v1471_v16  ;;  %v1995_v2 = vpop.eup %1994  ;;  %v1360_v58 = vsub.f32 1.0, %v1359_v42  ;;  %v2740_v40 = vadd.f32 1.0, %v1993_v53  ;;  %vm2742_vm9 = vcmp.eq.f32.partialorder %v1367_v56, 8.507059e+37 }
 0x144   : > { %v1593_v49 = vmul.f32 %v1476_v44, %v2603_v22  ;;  %v1479_v61 = vmul.f32 %v1995_v2, %v2711_v50  ;;  %1998 = vrcp.f32 %v2736_v10  ;;  %vm1364_vm10 = vweird.f32 %v1989_v48 }
 0x145   : > { %v1361_v63 = vmul.f32 %v1989_v48, %v1360_v58  ;;  %2000 = vrcp.f32 %v2740_v40  ;;  %v885_v22 = vadd.f32 %v847_v60, %v2514_v31  ;;  %v1370_v28 = vor.u32 1.1754944e-38, %v1369_v38  ;;  %vm1365_vm13 = vmor %vm1363_vm8, %vm1364_vm10  ;;  %v850_v12 = vpop.f32.mrf.mxu3 }
 0x146   : > { %1626 = vst.msk [vmem:[%s2359_s19 + $0xc8] sm:$0xff] %vm1600_vm6, %v1593_v49  ;;  %v1480_v27 = vsub.f32 1.0, %v1479_v61  ;;  %vm1483_vm11 = vweird.f32 %v2711_v50  ;;  %vm2753_vm12 = vcmp.eq.f32.partialorder %v1487_v8, 8.507059e+37  ;;  %v1490_v14 = vor.u32 1.1754944e-38, %v1489_v54  ;;  %v826_v59 = vpop.f32.mrf.mxu2 }
 0x147   : > { %v1362_v6 = vadd.f32 %v1989_v48, %v1361_v63  ;;  %v2758_v17 = vadd.f32 %v2638_v20, %v920_v57  ;;  %v580_v9 = vadd.f32 %v579_v62, %v457_v3  ;;  %vm1484_vm14 = vweird.f32 %v1995_v2 }
 0x148   : > { %v1481_v18 = vmul.f32 %v1995_v2, %v1480_v27  ;;  %v1382_v31 = vand.u32 2147483647, %v2736_v10  ;;  %v913_v39 = vmul.f32 %v2623_v45, %v877_v21  ;;  %v1997_v34 = vpop.eup %1996  ;;  %vm1378_vm15 = vweird.f32 %v2736_v10  ;;  %vm1485_vm2 = vmor %vm1483_vm11, %vm1484_vm14  ;;  %v460_v54 = vpop.f32.mrf.mxu0 }
 0x149   : > { %v1366_v7 = vsel %vm1365_vm13, %v1989_v48, %v1362_v6  ;;  %v1384_v25 = vand.u32 2147483648, %v2736_v10  ;;  %v1864_v29 = vmul.f32 -1.442695, %v2758_v17  ;;  %v921_v32 = vmul.f32 %v2623_v45, %v885_v22 }
 0x14a   : > { %v1999_v13 = vpop.eup %1998  ;;  %v1371_v23 = vsel %vm2742_vm9, %v1370_v28, %v1366_v7  ;;  %v1482_v26 = vadd.f32 %v1995_v2, %v1481_v18  ;;  %vm1498_vm0 = vweird.f32 %v2740_v40  ;;  %v2771_v33 = vadd.f32 1.0, %v1997_v34 }
 0x14b   : > { %v2774_v0 = vadd.f32 %v2638_v20, %v913_v39  ;;  %v2001_v51 = vpop.eup %2000  ;;  %v1586_v35 = vmul.f32 %v1371_v23, %v2641_v30  ;;  %v1374_v37 = vmul.f32 %v1999_v13, %v2736_v10  ;;  %2002 = vpow2.f32 %v1864_v29 }
 0x14c   : > { %v878_v46 = vadd.f32 %v826_v59, %v580_v9  ;;  %v1486_v1 = vsel %vm1485_vm2, %v1995_v2, %v1482_v26  ;;  %v1494_v47 = vmul.f32 %v2001_v51, %v2740_v40  ;;  %v1502_v60 = vand.u32 2147483647, %v2740_v40 }
 0x14d   : > { %2004 = vrcp.f32 %v2771_v33  ;;  %1619 = vst.msk [vmem:[%s2359_s19 + $0x90] sm:$0xff] %vm1600_vm6, %v1586_v35  ;;  %v1491_v30 = vsel %vm2753_vm12, %v1490_v14, %v1486_v1  ;;  %v1375_v48 = vsub.f32 1.0, %v1374_v37  ;;  %vm2788_vm3 = vcmp.eq.f32.partialorder %v1382_v31, 8.507059e+37  ;;  %v853_v10 = vpop.f32.mrf.mxu3 }
 0x14e   : > { %v1504_v56 = vand.u32 2147483648, %v2740_v40  ;;  %v1594_v38 = vmul.f32 %v1491_v30, %v2653_v19  ;;  %v1385_v41 = vor.u32 1.1754944e-38, %v1384_v25  ;;  %v1495_v43 = vsub.f32 1.0, %v1494_v47  ;;  %v582_v19 = vpop.f32.mrf.mxu1  ;;  %v829_v14 = vpop.f32.mrf.mxu2 }
 0x14f   : > { %v1857_v16 = vmul.f32 -1.442695, %v2774_v0  ;;  %v1376_v42 = vmul.f32 %v1999_v13, %v1375_v48  ;;  %vm1379_vm1 = vweird.f32 %v1999_v13  ;;  %v2796_v8 = vadd.f32 %v2638_v20, %v921_v32 }
 0x150   : > { %v914_v52 = vmul.f32 %v2623_v45, %v878_v46  ;;  %1627 = vst.msk [vmem:[%s2359_s19 + $0xd0] sm:$0xff] %vm1600_vm6, %v1594_v38  ;;  %v1496_v53 = vmul.f32 %v2001_v51, %v1495_v43  ;;  %vm1499_vm4 = vweird.f32 %v2001_v51  ;;  %v886_v44 = vadd.f32 %v850_v12, %v2528_v15  ;;  %vm1380_vm7 = vmor %vm1378_vm15, %vm1379_vm1 }
 0x151   : > { %2006 = vpow2.f32 %v1857_v16  ;;  %v2003_v57 = vpop.eup %2002  ;;  %v1377_v2 = vadd.f32 %v1999_v13, %v1376_v42  ;;  %vm2802_vm5 = vcmp.eq.f32.partialorder %v1502_v60, 8.507059e+37  ;;  %v1505_v58 = vor.u32 1.1754944e-38, %v1504_v56  ;;  %vm1500_vm8 = vmor %vm1498_vm0, %vm1499_vm4 }
 0x152   : > { %v1865_v5 = vmul.f32 -1.442695, %v2796_v8  ;;  %v1497_v21 = vadd.f32 %v2001_v51, %v1496_v53  ;;  %v2810_v3 = vadd.f32 1.0, %v2003_v57  ;;  %v2813_v15 = vadd.f32 %v2638_v20, %v914_v52 }
 0x153   : > { %v2005_v61 = vpop.eup %2004  ;;  %v922_v62 = vmul.f32 %v2623_v45, %v886_v44  ;;  %v1381_v63 = vsel %vm1380_vm7, %v1999_v13, %v1377_v2  ;;  %v583_v28 = vadd.f32 %v582_v19, %v460_v54  ;;  %v1397_v6 = vand.u32 2147483647, %v2771_v33 }
 0x154   : > { %v1389_v22 = vmul.f32 %v2005_v61, %v2771_v33  ;;  %2008 = vpow2.f32 %v1865_v5  ;;  %v1386_v27 = vsel %vm2788_vm3, %v1385_v41, %v1381_v63  ;;  %v1501_v11 = vsel %vm1500_vm8, %v2001_v51, %v1497_v21 }
 0x155   : > { %2010 = vrcp.f32 %v2810_v3  ;;  %v1587_v9 = vmul.f32 %v1386_v27, %v2691_v24  ;;  %v1506_v40 = vsel %vm2802_vm5, %v1505_v58, %v1501_v11  ;;  %v1399_v31 = vand.u32 2147483648, %v2771_v33 }
 0x156   : > { %v1390_v18 = vsub.f32 1.0, %v1389_v22  ;;  %v1595_v59 = vmul.f32 %v1506_v40, %v2694_v4  ;;  %v1858_v34 = vmul.f32 -1.442695, %v2813_v15  ;;  %v2831_v7 = vadd.f32 %v2638_v20, %v922_v62 }
 0x157   : > { %v2007_v39 = vpop.eup %2006  ;;  %v887_v25 = vadd.f32 %v853_v10, %v2548_v55  ;;  %1620 = vst.msk [vmem:[%s2359_s19 + $0x98] sm:$0xff] %vm1600_vm6, %v1587_v9  ;;  %vm1394_vm9 = vweird.f32 %v2005_v61  ;;  %v879_v32 = vadd.f32 %v829_v14, %v583_v28  ;;  %vm1393_vm10 = vweird.f32 %v2771_v33 }
 0x158   : > { %v1391_v29 = vmul.f32 %v2005_v61, %v1390_v18  ;;  %v2836_v24 = vadd.f32 1.0, %v2007_v39  ;;  %1628 = vst.msk [vmem:[%s2359_s19 + $0xd8] sm:$0xff] %vm1600_vm6, %v1595_v59  ;;  %2012 = vpow2.f32 %v1858_v34  ;;  %v1866_v12 = vmul.f32 -1.442695, %v2831_v7  ;;  %vm1395_vm11 = vmor %vm1393_vm10, %vm1394_vm9 }
 0x159   : > { %v1400_v23 = vor.u32 1.1754944e-38, %v1399_v31  ;;  %v915_v51 = vmul.f32 %v2623_v45, %v879_v32  ;;  %v923_v35 = vmul.f32 %v2623_v45, %v887_v25  ;;  %vm1398_vm12 = vcmp.eq.f32.partialorder %v1397_v6, 8.507059e+37 }
 0x15a   : > { %v2009_v4 = vpop.eup %2008  ;;  %v1392_v13 = vadd.f32 %v2005_v61, %v1391_v29  ;;  %2014 = vrcp.f32 %v2836_v24  ;;  %v1517_v60 = vand.u32 2147483647, %v2810_v3  ;;  %v1519_v30 = vand.u32 2147483648, %v2810_v3 }
 0x15b   : > { %v2011_v55 = vpop.eup %2010  ;;  %v2843_v26 = vadd.f32 1.0, %v2009_v4  ;;  %2016 = vpow2.f32 %v1866_v12  ;;  %v2853_v50 = vadd.f32 %v2638_v20, %v915_v51  ;;  %v2856_v45 = vadd.f32 %v2638_v20, %v923_v35 }
 0x15c   : > { %v1396_v37 = vsel %vm1395_vm11, %v2005_v61, %v1392_v13  ;;  %v1509_v46 = vmul.f32 %v2011_v55, %v2810_v3  ;;  %vm1514_vm13 = vweird.f32 %v2011_v55  ;;  %vm1513_vm14 = vweird.f32 %v2810_v3 }
 0x15d   : > { %v1401_v1 = vsel %vm1398_vm12, %v1400_v23, %v1396_v37  ;;  %2018 = vrcp.f32 %v2843_v26  ;;  %v1859_v16 = vmul.f32 -1.442695, %v2853_v50  ;;  %vm1518_vm15 = vcmp.eq.f32.partialorder %v1517_v60, 8.507059e+37  ;;  %vm1515_vm0 = vmor %vm1513_vm14, %vm1514_vm13 }
 0x15e   : > { %v1588_v33 = vmul.f32 %v1401_v1, %v2722_v36  ;;  %v1510_v47 = vsub.f32 1.0, %v1509_v46  ;;  %v2013_v48 = vpop.eup %2012  ;;  %v1520_v52 = vor.u32 1.1754944e-38, %v1519_v30  ;;  %v1867_v54 = vmul.f32 -1.442695, %v2856_v45 }
 0x15f   : > { %v2860_v41 = vadd.f32 1.0, %v2013_v48  ;;  %v1412_v57 = vand.u32 2147483647, %v2836_v24  ;;  %v1414_v2 = vand.u32 2147483648, %v2836_v24  ;;  %vm1408_vm3 = vweird.f32 %v2836_v24 }
 0x160   : > { %v2015_v56 = vpop.eup %2014  ;;  %1621 = vst.msk [vmem:[%s2359_s19 + $0xa0] sm:$0xff] %vm1600_vm6, %v1588_v33  ;;  %v1511_v38 = vmul.f32 %v2011_v55, %v1510_v47  ;;  %v1534_v62 = vand.u32 2147483648, %v2843_v26  ;;  %v1532_v10 = vand.u32 2147483647, %v2843_v26  ;;  %vm1528_vm7 = vweird.f32 %v2843_v26 }
 0x161   : > { %v2017_v36 = vpop.eup %2016  ;;  %v1404_v43 = vmul.f32 %v2015_v56, %v2836_v24  ;;  %2020 = vrcp.f32 %v2860_v41  ;;  %vm1409_vm2 = vweird.f32 %v2015_v56  ;;  %v1415_v22 = vor.u32 1.1754944e-38, %v1414_v2 }
 0x162   : > { %v1512_v42 = vadd.f32 %v2011_v55, %v1511_v38  ;;  %v2866_v44 = vadd.f32 1.0, %v2017_v36  ;;  %2022 = vpow2.f32 %v1859_v16  ;;  %vm1410_vm1 = vmor %vm1408_vm3, %vm1409_vm2  ;;  %vm1413_vm5 = vcmp.eq.f32.partialorder %v1412_v57, 8.507059e+37 }
 0x163   : > { %v2019_v20 = vpop.eup %2018  ;;  %v1405_v53 = vsub.f32 1.0, %v1404_v43  ;;  %v1535_v31 = vor.u32 1.1754944e-38, %v1534_v62  ;;  %v1429_v59 = vand.u32 2147483648, %v2860_v41  ;;  %vm1533_vm9 = vcmp.eq.f32.partialorder %v1532_v10, 8.507059e+37 }
 0x164   : > { %v1516_v19 = vsel %vm1515_vm0, %v2011_v55, %v1512_v42  ;;  %v1524_v49 = vmul.f32 %v2019_v20, %v2843_v26  ;;  %2024 = vrcp.f32 %v2866_v44  ;;  %vm1529_vm4 = vweird.f32 %v2019_v20 }
 0x165   : > { %v1521_v58 = vsel %vm1518_vm15, %v1520_v52, %v1516_v19  ;;  %v1406_v5 = vmul.f32 %v2015_v56, %v1405_v53  ;;  %2026 = vpow2.f32 %v1867_v54  ;;  %vm1530_vm8 = vmor %vm1528_vm7, %vm1529_vm4  ;;  %v1427_v12 = vand.u32 2147483647, %v2860_v41 }
 0x166   : > { %v1596_v61 = vmul.f32 %v1521_v58, %v2758_v17  ;;  %v1525_v21 = vsub.f32 1.0, %v1524_v49  ;;  %vm1423_vm11 = vweird.f32 %v2860_v41  ;;  %v1430_v55 = vor.u32 1.1754944e-38, %v1429_v59 }
 0x167   : > { %v1407_v3 = vadd.f32 %v2015_v56, %v1406_v5  ;;  %v2021_v63 = vpop.eup %2020  ;;  %v1549_v26 = vand.u32 2147483648, %v2866_v44  ;;  %v1547_v35 = vand.u32 2147483647, %v2866_v44  ;;  %vm1428_vm14 = vcmp.eq.f32.partialorder %v1427_v12, 8.507059e+37 }
 0x168   : > { %1629 = vst.msk [vmem:[%s2359_s19 + $0xe0] sm:$0xff] %vm1600_vm6, %v1596_v61  ;;  %v1526_v28 = vmul.f32 %v2019_v20, %v1525_v21  ;;  %v2023_v27 = vpop.eup %2022  ;;  %v1419_v17 = vmul.f32 %v2021_v63, %v2860_v41  ;;  %vm1424_vm10 = vweird.f32 %v2021_v63  ;;  %vm1543_vm15 = vweird.f32 %v2866_v44 }
 0x169   : > { %v1411_v11 = vsel %vm1410_vm1, %v2015_v56, %v1407_v3  ;;  %v1079_v9 = vadd.f32 1.0, %v2023_v27  ;;  %vm1425_vm12 = vmor %vm1423_vm11, %vm1424_vm10  ;;  %v1550_v47 = vor.u32 1.1754944e-38, %v1549_v26  ;;  %vm1548_vm2 = vcmp.eq.f32.partialorder %v1547_v35, 8.507059e+37 }
 0x16a   : > { %v1416_v6 = vsel %vm1413_vm5, %v1415_v22, %v1411_v11  ;;  %v1527_v14 = vadd.f32 %v2019_v20, %v1526_v28  ;;  %v2025_v40 = vpop.eup %2024  ;;  %v1420_v39 = vsub.f32 1.0, %v1419_v17 }
 0x16b   : > { %v1589_v18 = vmul.f32 %v1416_v6, %v2774_v0  ;;  %v1539_v25 = vmul.f32 %v2025_v40, %v2866_v44  ;;  %2028 = vrcp.f32 %v1079_v9  ;;  %v2027_v29 = vpop.eup %2026  ;;  %vm1544_vm13 = vweird.f32 %v2025_v40 }
 0x16c   : > { %v1531_v34 = vsel %vm1530_vm8, %v2019_v20, %v1527_v14  ;;  %v1421_v32 = vmul.f32 %v2021_v63, %v1420_v39  ;;  %v1087_v13 = vadd.f32 1.0, %v2027_v29  ;;  %vm1545_vm0 = vmor %vm1543_vm15, %vm1544_vm13  ;;  %v1442_v36 = vand.u32 2147483647, %v1079_v9 }
 0x16d   : > { %1622 = vst.msk [vmem:[%s2359_s19 + $0xa8] sm:$0xff] %vm1600_vm6, %v1589_v18  ;;  %v1536_v24 = vsel %vm1533_vm9, %v1535_v31, %v1531_v34  ;;  %v1540_v4 = vsub.f32 1.0, %v1539_v25  ;;  %v1444_v43 = vand.u32 2147483648, %v1079_v9  ;;  %vm1438_vm1 = vweird.f32 %v1079_v9 }
 0x16e   : > { %v1597_v0 = vmul.f32 %v1536_v24, %v2796_v8  ;;  %v1422_v23 = vadd.f32 %v2021_v63, %v1421_v32  ;;  %2030 = vrcp.f32 %v1087_v13  ;;  %vm1443_vm5 = vcmp.eq.f32.partialorder %v1442_v36, 8.507059e+37 }
 0x16f   : > { %v1541_v51 = vmul.f32 %v2025_v40, %v1540_v4  ;;  %v1445_v20 = vor.u32 1.1754944e-38, %v1444_v43  ;;  %v1564_v53 = vand.u32 2147483648, %v1087_v13  ;;  %vm1558_vm8 = vweird.f32 %v1087_v13 }
 0x170   : > { %1630 = vst.msk [vmem:[%s2359_s19 + $0xe8] sm:$0xff] %vm1600_vm6, %v1597_v0  ;;  %v1426_v37 = vsel %vm1425_vm12, %v2021_v63, %v1422_v23 }
 0x171   : > { %v2029_v8 = vpop.eup %2028  ;;  %v1431_v46 = vsel %vm1428_vm14, %v1430_v55, %v1426_v37  ;;  %v1542_v1 = vadd.f32 %v2025_v40, %v1541_v51  ;;  %v1565_v49 = vor.u32 1.1754944e-38, %v1564_v53 }
 0x172   : > { %v1590_v33 = vmul.f32 %v1431_v46, %v2813_v15  ;;  %v1434_v60 = vmul.f32 %v2029_v8, %v1079_v9  ;;  %vm1439_vm3 = vweird.f32 %v2029_v8 }
 0x173   : > { %v1546_v30 = vsel %vm1545_vm0, %v2025_v40, %v1542_v1  ;;  %vm1440_vm4 = vmor %vm1438_vm1, %vm1439_vm3 }
 0x174   : > { %1623 = vst.msk [vmem:[%s2359_s19 + $0xb0] sm:$0xff] %vm1600_vm6, %v1590_v33  ;;  %v1551_v48 = vsel %vm1548_vm2, %v1550_v47, %v1546_v30  ;;  %v1435_v56 = vsub.f32 1.0, %v1434_v60  ;;  %v2031_v38 = vpop.eup %2030 }
 0x175   : > { %v1598_v41 = vmul.f32 %v1551_v48, %v2831_v7  ;;  %v1554_v42 = vmul.f32 %v2031_v38, %v1087_v13  ;;  %vm1559_vm7 = vweird.f32 %v2031_v38  ;;  %v1562_v7 = vand.u32 2147483647, %v1087_v13 }
 0x176   : > { %v1436_v16 = vmul.f32 %v2029_v8, %v1435_v56  ;;  %vm1560_vm9 = vmor %vm1558_vm8, %vm1559_vm7 }
 0x177   : > { %1631 = vst.msk [vmem:[%s2359_s19 + $0xf0] sm:$0xff] %vm1600_vm6, %v1598_v41  ;;  %v1555_v52 = vsub.f32 1.0, %v1554_v42  ;;  %vm1563_vm10 = vcmp.eq.f32.partialorder %v1562_v7, 8.507059e+37 }
 0x178   : > { %v1437_v15 = vadd.f32 %v2029_v8, %v1436_v16 }
 0x179   : > { %v1556_v54 = vmul.f32 %v2031_v38, %v1555_v52 }
 0x17a   : > { %v1441_v44 = vsel %vm1440_vm4, %v2029_v8, %v1437_v15 }
 0x17b   : > { %v1446_v19 = vsel %vm1443_vm5, %v1445_v20, %v1441_v44  ;;  %v1557_v2 = vadd.f32 %v2031_v38, %v1556_v54 }
 0x17c   : > { %v1591_v57 = vmul.f32 %v1446_v19, %v2853_v50 }
 0x17d   : > { %v1561_v58 = vsel %vm1560_vm9, %v2031_v38, %v1557_v2 }
 0x17e   : > { %1624 = vst.msk [vmem:[%s2359_s19 + $0xb8] sm:$0xff] %vm1600_vm6, %v1591_v57  ;;  %v1566_v5 = vsel %vm1563_vm10, %v1565_v49, %v1561_v58 }
 0x17f   : > { %v1599_v61 = vmul.f32 %v1566_v5, %v2856_v45 }
 0x181   : > { %1632 = vst.msk [vmem:[%s2359_s19 + $0xf8] sm:$0xff] %vm1600_vm6, %v1599_v61 }
 0x182 PF: > { %s14_s17 = sadd.s32 1, %s2056_s17   ;;  %s2936_s15 = smov %s2052_s16 }
 0x183   : > { %p11_p5 = scmp.ge.s32.totalorder %s14_s17, 4   ;;  %s2937_s16 = smov %s2939_s18 }
 0x185   :  { %13 = sbr.rel (!%p11_p5) target bundleno = 2 (0x2), region = 68 }

</bundles_post_ra>
